<compile_context>
chip_gen: v5e
topology: v5e:2x2
jax: 0.10.0
libtpu: 0.0.40
codegen_flags: <defaults>
</compile_context>

<pallas_src>
import functools
import math

import numpy as np
import jax
import jax.numpy as jnp
from jax.experimental import pallas as pl
from jax.experimental.pallas import tpu as pltpu


def _round_up(a, b):
    return ((a + b - 1) // b) * b


# ----------------------------------------------------------------------------
# Fused Conv3d(k=3, s=1, p=1) + bias + ReLU + channel-concat Pallas kernel
# ----------------------------------------------------------------------------

def _down_tile_kernel(x_lo_ref, x_mid_ref, x_hi_ref, w_ref, b_ref, m_ref,
                      o_ref, col_ref, *, tm, cin, taps):
    """One (sample, voxel-tile) grid step.

    x_lo/x_mid/x_hi: (Cin, TM) f32  consecutive TM-wide windows of the
                     zero-padded, flattened (d*h*w) pooled sample; x_mid is
                     exactly this tile's pooled voxels.
    w_ref:   (Cout, 27*Cin) bf16  tap-major conv weights
    b_ref:   (Cout, 1)      f32   bias
    m_ref:   (9, TM)        f32   0/1 masks killing H/W wrap-around, row=kh*3+kw
    o_ref:   (Cin+Cout, TM) f32   output tile (channels x flattened voxels)
    col_ref: (27*Cin, TM)   bf16  VMEM scratch: im2col^T of this tile
    """
    # Two aligned 2*TM windows so every tap becomes a static lane slice.
    lo_mid = jnp.concatenate([x_lo_ref[...], x_mid_ref[...]], axis=1)
    mid_hi = jnp.concatenate([x_mid_ref[...], x_hi_ref[...]], axis=1)

    # Pack the 27 shifted tap windows into the im2col^T scratch.
    for t, (off, mrow) in enumerate(taps):
        if off <= 0:
            win = lo_mid[:, tm + off:2 * tm + off]      # (Cin, TM) f32
        else:
            win = mid_hi[:, off:tm + off]
        if mrow is not None:                            # kill H/W wrap-around
            win = win * m_ref[mrow:mrow + 1, :]
        col_ref[t * cin:(t + 1) * cin, :] = win.astype(col_ref.dtype)

    # One MXU matmul: (Cout, 27*Cin) @ (27*Cin, TM) -> (Cout, TM), f32 acc.
    acc = jnp.dot(w_ref[...], col_ref[...],
                  preferred_element_type=jnp.float32)
    y = jnp.maximum(acc + b_ref[...], 0.0)              # bias + ReLU

    # Final tile: exact f32 pooled passthrough stacked on top of the conv.
    o_ref[...] = jnp.concatenate([x_mid_ref[...], y], axis=0).astype(o_ref.dtype)


def conv_cat_pallas(x_pool, w, b, *, tm_target=256):
    """cat([x_pool, relu(conv3x3x3(x_pool) + b)], axis=1) in one Pallas call.

    x_pool: [N, Cin, D, H, W] f32, w: [Cout, Cin, 3, 3, 3] f32, b: [Cout] f32
    returns [N, Cin+Cout, D, H, W] f32.
    """
    n, cin, do, ho, wo = x_pool.shape
    cout = w.shape[0]
    hw = ho * wo
    m_tot = do * hw
    halo = hw + wo + 1                       # largest |tap row offset|

    # Tile size: multiple of 128 (lane-dense stores) and of ho*wo (one shared
    # boundary mask for all tiles), and >= halo so a tile only touches its own
    # and the two neighbouring TM-wide slab windows.
    lcm = math.lcm(hw, 128)
    tm = lcm * max(1, -(-max(tm_target, halo) // lcm))
    m_tiles = pl.cdiv(m_tot, tm)

    # Zero-padded flattened (d,h,w)-major slab: one leading TM window of zeros
    # (covers the D/H/W "before" halo) plus trailing zeros for the last tile's
    # "after" halo.  Kept f32 so the pooled passthrough is bit-exact; the conv
    # operands are cast to bf16 inside the kernel.
    n_cols = (m_tiles + 2) * tm
    slab = jnp.pad(x_pool.reshape(n, cin, m_tot),
                   ((0, 0), (0, 0), (tm, n_cols - tm - m_tot)))

    # Tap-major weights: column block t=(kd*3+kh)*3+kw holds W[:, :, kd,kh,kw].
    w2 = w.transpose(0, 2, 3, 4, 1).reshape(cout, 27 * cin).astype(jnp.bfloat16)
    b2 = b.reshape(cout, 1).astype(jnp.float32)

    # Static tap table: flattened-row offset + which H/W boundary mask row.
    taps = []
    for kd in range(3):
        for kh in range(3):
            for kw in range(3):
                off = (kd - 1) * hw + (kh - 1) * wo + (kw - 1)
                mrow = None if (kh == 1 and kw == 1) else kh * 3 + kw
                taps.append((off, mrow))
    taps = tuple(taps)

    # 0/1 masks killing wrap-around H/W reads; identical for every tile since
    # tm % (ho*wo) == 0.  Built once at trace time (tiny constant input).
    j = np.arange(tm)
    ow_j = j % wo
    oh_j = (j // wo) % ho
    mask = np.ones((9, tm), np.float32)
    for kh in range(3):
        vh = np.ones(tm, bool) if kh == 1 else (oh_j >= 1 if kh == 0 else oh_j <= ho - 2)
        for kw in range(3):
            vw = np.ones(tm, bool) if kw == 1 else (ow_j >= 1 if kw == 0 else ow_j <= wo - 2)
            mask[kh * 3 + kw] = (vh & vw).astype(np.float32)
    mask = jnp.asarray(mask)

    kernel = functools.partial(_down_tile_kernel, tm=tm, cin=cin, taps=taps)

    # Rough per-step VMEM (double-buffered blocks + scratch) -> explicit limit.
    est = 2 * (3 * _round_up(cin, 8) * tm * 4            # slab halo windows
               + _round_up(cin + cout, 8) * tm * 4       # output tile
               + _round_up(cout, 16) * _round_up(27 * cin, 128) * 2
               + _round_up(9, 8) * tm * 4)               # masks
    est += _round_up(27 * cin, 16) * tm * 2               # im2col^T scratch
    vmem_limit = int(min(64 * 2 ** 20, max(16 * 2 ** 20, 2 * est)))

    out = pl.pallas_call(
        kernel,
        out_shape=jax.ShapeDtypeStruct((n, cin + cout, m_tot), jnp.float32),
        grid=(n, m_tiles),
        in_specs=[
            pl.BlockSpec((None, cin, tm), lambda ni, i: (ni, 0, i)),      # left
            pl.BlockSpec((None, cin, tm), lambda ni, i: (ni, 0, i + 1)),  # mid
            pl.BlockSpec((None, cin, tm), lambda ni, i: (ni, 0, i + 2)),  # right
            pl.BlockSpec((cout, 27 * cin), lambda ni, i: (0, 0)),
            pl.BlockSpec((cout, 1), lambda ni, i: (0, 0)),
            pl.BlockSpec((9, tm), lambda ni, i: (0, 0)),
        ],
        out_specs=pl.BlockSpec((None, cin + cout, tm), lambda ni, i: (ni, 0, i)),
        scratch_shapes=[pltpu.VMEM((27 * cin, tm), jnp.bfloat16)],
        compiler_params=pltpu.CompilerParams(
            dimension_semantics=("parallel", "parallel"),
            vmem_limit_bytes=vmem_limit),
    )(slab, slab, slab, w2, b2, mask)

    # Row-major split of the flattened voxel axis: free (no data movement).
    return out.reshape(n, cin + cout, do, ho, wo)


# ----------------------------------------------------------------------------
# Down forward: MaxPool3d(2) -> fused conv1 + ReLU + channel concat
# ----------------------------------------------------------------------------

def down_forward(x, params):
    """x: [N, Cin, D, H, W] f32 -> [N, Cin+Cout, D//2, H//2, W//2] f32."""
    n, cin, d, h, w = x.shape
    do, ho, wo = d // 2, h // 2, w // 2
    # MaxPool3d(2): single fused reshape+max pass over x (memory-bound XLA
    # glue); everything downstream is one Pallas call.
    xc = x[:, :, :2 * do, :2 * ho, :2 * wo]
    x_pool = xc.reshape(n, cin, do, 2, ho, 2, wo, 2).max(axis=(3, 5, 7))
    return conv_cat_pallas(x_pool, params["w"], params["b"])


# ----------------------------------------------------------------------------
# Params init + pure-JAX f32 reference (for validation)
# ----------------------------------------------------------------------------

def init_down_params(key, in_channels, out_channels):
    # Only conv1 of DoubleConv is exercised by the reference forward pass.
    k_w, k_b = jax.random.split(key)
    fan_in = in_channels * 27
    w_bound = math.sqrt(6.0 / fan_in)            # kaiming_uniform-style
    b_bound = 1.0 / math.sqrt(fan_in)
    w = jax.random.uniform(k_w, (out_channels, in_channels, 3, 3, 3),
                           jnp.float32, -w_bound, w_bound)
    b = jax.random.uniform(k_b, (out_channels,), jnp.float32,
                           -b_bound, b_bound)
    return {"w": w, "b": b}


def down_reference(x, params):
    w, b = params["w"], params["b"]
    n, cin, d, h, wd = x.shape
    do, ho, wo = d // 2, h // 2, wd // 2
    xc = x[:, :, :2 * do, :2 * ho, :2 * wo]
    x_pool = xc.reshape(n, cin, do, 2, ho, 2, wo, 2).max(axis=(3, 5, 7))
    xpad = jnp.pad(x_pool, ((0, 0), (0, 0), (1, 1), (1, 1), (1, 1)))
    y = jnp.zeros((n, w.shape[0], do, ho, wo), jnp.float32)
    for kd in range(3):
        for kh in range(3):
            for kw in range(3):
                xs = xpad[:, :, kd:kd + do, kh:kh + ho, kw:kw + wo]
                y = y + jnp.einsum("ncdhw,oc->nodhw", xs, w[:, :, kd, kh, kw])
    y = jnp.maximum(y + b[None, :, None, None, None], 0.0)
    return jnp.concatenate([x_pool, y], axis=1)


# ----------------------------------------------------------------------------
# Main
# ----------------------------------------------------------------------------

if __name__ == "__main__":
    key = jax.random.PRNGKey(0)
    k_param, k_data = jax.random.split(key)

    in_channels, out_channels = 4, 32
    n, d, h, w = 2, 16, 16, 16

    params = init_down_params(k_param, in_channels, out_channels)
    x = jax.random.normal(k_data, (n, in_channels, d, h, w), jnp.float32)

    fwd = jax.jit(down_forward)
    z = fwd(x, params)
    jax.block_until_ready(z)

    assert z.shape == (n, in_channels + out_channels, d // 2, h // 2, w // 2), z.shape
    assert bool(jnp.all(jnp.isfinite(z)))

    ref = down_reference(x, params)
    err = float(jnp.max(jnp.abs(z - ref)))
    assert err < 1e-1, f"max abs error vs f32 reference: {err}"
    print("KERNEL_OK")
</pallas_src>

<mosaic_0001>
module attributes {stable_mosaic.version = 11 : i64} {
  func.func @_down_tile_kernel(%arg0: i32, %arg1: i32, %arg2: memref<1x4x256xf32, #tpu.memory_space<vmem>>, %arg3: memref<1x4x256xf32, #tpu.memory_space<vmem>>, %arg4: memref<1x4x256xf32, #tpu.memory_space<vmem>>, %arg5: memref<32x108xbf16, #tpu.memory_space<vmem>>, %arg6: memref<32x1xf32, #tpu.memory_space<vmem>>, %arg7: memref<9x256xf32, #tpu.memory_space<vmem>>, %arg8: memref<1x36x256xf32, #tpu.memory_space<vmem>>, %arg9: memref<108x256xbf16, #tpu.memory_space<vmem>>) attributes {dimension_semantics = [#tpu.dimension_semantics<parallel>, #tpu.dimension_semantics<parallel>], iteration_bounds = array<i64: 2, 2>, scalar_prefetch = 0 : i64, scratch_operands = 1 : i64, tpu.core_type = #tpu.core_type<tc>, window_params = [{transform_indices = @transform_0, window_bounds = array<i64: 1, 4, 256>}, {transform_indices = @transform_1, window_bounds = array<i64: 1, 4, 256>}, {transform_indices = @transform_2, window_bounds = array<i64: 1, 4, 256>}, {pipeline_mode = #tpu.pipeline_mode<synchronous>, transform_indices = @transform_3, window_bounds = array<i64: 32, 108>}, {pipeline_mode = #tpu.pipeline_mode<synchronous>, transform_indices = @transform_4, window_bounds = array<i64: 32, 1>}, {pipeline_mode = #tpu.pipeline_mode<synchronous>, transform_indices = @transform_5, window_bounds = array<i64: 9, 256>}, {transform_indices = @transform_6, window_bounds = array<i64: 1, 36, 256>}]} {
    %c0 = arith.constant 0 : index
    %c0_0 = arith.constant 0 : index
    %c0_1 = arith.constant 0 : index
    %0 = vector.load %arg2[%c0, %c0_0, %c0_1] : memref<1x4x256xf32, #tpu.memory_space<vmem>>, vector<1x4x256xf32>
    %1 = vector.shape_cast %0 : vector<1x4x256xf32> to vector<4x256xf32>
    %c0_2 = arith.constant 0 : index
    %c0_3 = arith.constant 0 : index
    %c0_4 = arith.constant 0 : index
    %2 = vector.load %arg3[%c0_2, %c0_3, %c0_4] : memref<1x4x256xf32, #tpu.memory_space<vmem>>, vector<1x4x256xf32>
    %3 = vector.shape_cast %2 : vector<1x4x256xf32> to vector<4x256xf32>
    %4 = tpu.concatenate %1, %3 in 1 : vector<4x256xf32>, vector<4x256xf32> -> vector<4x512xf32>
    %c0_5 = arith.constant 0 : index
    %c0_6 = arith.constant 0 : index
    %c0_7 = arith.constant 0 : index
    %5 = vector.load %arg3[%c0_5, %c0_6, %c0_7] : memref<1x4x256xf32, #tpu.memory_space<vmem>>, vector<1x4x256xf32>
    %6 = vector.shape_cast %5 : vector<1x4x256xf32> to vector<4x256xf32>
    %c0_8 = arith.constant 0 : index
    %c0_9 = arith.constant 0 : index
    %c0_10 = arith.constant 0 : index
    %7 = vector.load %arg4[%c0_8, %c0_9, %c0_10] : memref<1x4x256xf32, #tpu.memory_space<vmem>>, vector<1x4x256xf32>
    %8 = vector.shape_cast %7 : vector<1x4x256xf32> to vector<4x256xf32>
    %9 = tpu.concatenate %6, %8 in 1 : vector<4x256xf32>, vector<4x256xf32> -> vector<4x512xf32>
    %10 = vector.extract_strided_slice %4 {offsets = [0, 183], sizes = [4, 256], strides = [1, 1]} : vector<4x512xf32> to vector<4x256xf32>
    %c0_11 = arith.constant 0 : index
    %c0_12 = arith.constant 0 : index
    %11 = vector.load %arg7[%c0_11, %c0_12] : memref<9x256xf32, #tpu.memory_space<vmem>>, vector<1x256xf32>
    %12 = vector.broadcast %11 : vector<1x256xf32> to vector<4x256xf32>
    %13 = arith.mulf %10, %12 : vector<4x256xf32>
    %14 = arith.truncf %13 : vector<4x256xf32> to vector<4x256xbf16>
    %c0_13 = arith.constant 0 : index
    %c0_14 = arith.constant 0 : index
    %15 = vector.load %arg9[%c0_13, %c0_14] : memref<108x256xbf16, #tpu.memory_space<vmem>>, vector<4x256xbf16>
    tpu.vector_store %arg9[%c0_13, %c0_14], %14 {strides = array<i32>} : memref<108x256xbf16, #tpu.memory_space<vmem>>, vector<4x256xbf16>,
    %16 = vector.extract_strided_slice %4 {offsets = [0, 184], sizes = [4, 256], strides = [1, 1]} : vector<4x512xf32> to vector<4x256xf32>
    %c1 = arith.constant 1 : index
    %c0_15 = arith.constant 0 : index
    %17 = vector.load %arg7[%c1, %c0_15] : memref<9x256xf32, #tpu.memory_space<vmem>>, vector<1x256xf32>
    %18 = vector.broadcast %17 : vector<1x256xf32> to vector<4x256xf32>
    %19 = arith.mulf %16, %18 : vector<4x256xf32>
    %20 = arith.truncf %19 : vector<4x256xf32> to vector<4x256xbf16>
    %c4 = arith.constant 4 : index
    %c0_16 = arith.constant 0 : index
    %21 = vector.load %arg9[%c4, %c0_16] : memref<108x256xbf16, #tpu.memory_space<vmem>>, vector<4x256xbf16>
    tpu.vector_store %arg9[%c4, %c0_16], %20 {strides = array<i32>} : memref<108x256xbf16, #tpu.memory_space<vmem>>, vector<4x256xbf16>,
    %22 = vector.extract_strided_slice %4 {offsets = [0, 185], sizes = [4, 256], strides = [1, 1]} : vector<4x512xf32> to vector<4x256xf32>
    %c2 = arith.constant 2 : index
    %c0_17 = arith.constant 0 : index
    %23 = vector.load %arg7[%c2, %c0_17] : memref<9x256xf32, #tpu.memory_space<vmem>>, vector<1x256xf32>
    %24 = vector.broadcast %23 : vector<1x256xf32> to vector<4x256xf32>
    %25 = arith.mulf %22, %24 : vector<4x256xf32>
    %26 = arith.truncf %25 : vector<4x256xf32> to vector<4x256xbf16>
    %c8 = arith.constant 8 : index
    %c0_18 = arith.constant 0 : index
    %27 = vector.load %arg9[%c8, %c0_18] : memref<108x256xbf16, #tpu.memory_space<vmem>>, vector<4x256xbf16>
    tpu.vector_store %arg9[%c8, %c0_18], %26 {strides = array<i32>} : memref<108x256xbf16, #tpu.memory_space<vmem>>, vector<4x256xbf16>,
    %28 = vector.extract_strided_slice %4 {offsets = [0, 191], sizes = [4, 256], strides = [1, 1]} : vector<4x512xf32> to vector<4x256xf32>
    %c3 = arith.constant 3 : index
    %c0_19 = arith.constant 0 : index
    %29 = vector.load %arg7[%c3, %c0_19] : memref<9x256xf32, #tpu.memory_space<vmem>>, vector<1x256xf32>
    %30 = vector.broadcast %29 : vector<1x256xf32> to vector<4x256xf32>
    %31 = arith.mulf %28, %30 : vector<4x256xf32>
    %32 = arith.truncf %31 : vector<4x256xf32> to vector<4x256xbf16>
    %c12 = arith.constant 12 : index
    %c0_20 = arith.constant 0 : index
    %33 = vector.load %arg9[%c12, %c0_20] : memref<108x256xbf16, #tpu.memory_space<vmem>>, vector<4x256xbf16>
    tpu.vector_store %arg9[%c12, %c0_20], %32 {strides = array<i32>} : memref<108x256xbf16, #tpu.memory_space<vmem>>, vector<4x256xbf16>,
    %34 = vector.extract_strided_slice %4 {offsets = [0, 192], sizes = [4, 256], strides = [1, 1]} : vector<4x512xf32> to vector<4x256xf32>
    %35 = arith.truncf %34 : vector<4x256xf32> to vector<4x256xbf16>
    %c16 = arith.constant 16 : index
    %c0_21 = arith.constant 0 : index
    %36 = vector.load %arg9[%c16, %c0_21] : memref<108x256xbf16, #tpu.memory_space<vmem>>, vector<4x256xbf16>
    tpu.vector_store %arg9[%c16, %c0_21], %35 {strides = array<i32>} : memref<108x256xbf16, #tpu.memory_space<vmem>>, vector<4x256xbf16>,
    %37 = vector.extract_strided_slice %4 {offsets = [0, 193], sizes = [4, 256], strides = [1, 1]} : vector<4x512xf32> to vector<4x256xf32>
    %c5 = arith.constant 5 : index
    %c0_22 = arith.constant 0 : index
    %38 = vector.load %arg7[%c5, %c0_22] : memref<9x256xf32, #tpu.memory_space<vmem>>, vector<1x256xf32>
    %39 = vector.broadcast %38 : vector<1x256xf32> to vector<4x256xf32>
    %40 = arith.mulf %37, %39 : vector<4x256xf32>
    %41 = arith.truncf %40 : vector<4x256xf32> to vector<4x256xbf16>
    %c20 = arith.constant 20 : index
    %c0_23 = arith.constant 0 : index
    %42 = vector.load %arg9[%c20, %c0_23] : memref<108x256xbf16, #tpu.memory_space<vmem>>, vector<4x256xbf16>
    tpu.vector_store %arg9[%c20, %c0_23], %41 {strides = array<i32>} : memref<108x256xbf16, #tpu.memory_space<vmem>>, vector<4x256xbf16>,
    %43 = vector.extract_strided_slice %4 {offsets = [0, 199], sizes = [4, 256], strides = [1, 1]} : vector<4x512xf32> to vector<4x256xf32>
    %c6 = arith.constant 6 : index
    %c0_24 = arith.constant 0 : index
    %44 = vector.load %arg7[%c6, %c0_24] : memref<9x256xf32, #tpu.memory_space<vmem>>, vector<1x256xf32>
    %45 = vector.broadcast %44 : vector<1x256xf32> to vector<4x256xf32>
    %46 = arith.mulf %43, %45 : vector<4x256xf32>
    %47 = arith.truncf %46 : vector<4x256xf32> to vector<4x256xbf16>
    %c24 = arith.constant 24 : index
    %c0_25 = arith.constant 0 : index
    %48 = vector.load %arg9[%c24, %c0_25] : memref<108x256xbf16, #tpu.memory_space<vmem>>, vector<4x256xbf16>
    tpu.vector_store %arg9[%c24, %c0_25], %47 {strides = array<i32>} : memref<108x256xbf16, #tpu.memory_space<vmem>>, vector<4x256xbf16>,
    %49 = vector.extract_strided_slice %4 {offsets = [0, 200], sizes = [4, 256], strides = [1, 1]} : vector<4x512xf32> to vector<4x256xf32>
    %c7 = arith.constant 7 : index
    %c0_26 = arith.constant 0 : index
    %50 = vector.load %arg7[%c7, %c0_26] : memref<9x256xf32, #tpu.memory_space<vmem>>, vector<1x256xf32>
    %51 = vector.broadcast %50 : vector<1x256xf32> to vector<4x256xf32>
    %52 = arith.mulf %49, %51 : vector<4x256xf32>
    %53 = arith.truncf %52 : vector<4x256xf32> to vector<4x256xbf16>
    %c28 = arith.constant 28 : index
    %c0_27 = arith.constant 0 : index
    %54 = vector.load %arg9[%c28, %c0_27] : memref<108x256xbf16, #tpu.memory_space<vmem>>, vector<4x256xbf16>
    tpu.vector_store %arg9[%c28, %c0_27], %53 {strides = array<i32>} : memref<108x256xbf16, #tpu.memory_space<vmem>>, vector<4x256xbf16>,
    %55 = vector.extract_strided_slice %4 {offsets = [0, 201], sizes = [4, 256], strides = [1, 1]} : vector<4x512xf32> to vector<4x256xf32>
    %c8_28 = arith.constant 8 : index
    %c0_29 = arith.constant 0 : index
    %56 = vector.load %arg7[%c8_28, %c0_29] : memref<9x256xf32, #tpu.memory_space<vmem>>, vector<1x256xf32>
    %57 = vector.broadcast %56 : vector<1x256xf32> to vector<4x256xf32>
    %58 = arith.mulf %55, %57 : vector<4x256xf32>
    %59 = arith.truncf %58 : vector<4x256xf32> to vector<4x256xbf16>
    %c32 = arith.constant 32 : index
    %c0_30 = arith.constant 0 : index
    %60 = vector.load %arg9[%c32, %c0_30] : memref<108x256xbf16, #tpu.memory_space<vmem>>, vector<4x256xbf16>
    tpu.vector_store %arg9[%c32, %c0_30], %59 {strides = array<i32>} : memref<108x256xbf16, #tpu.memory_space<vmem>>, vector<4x256xbf16>,
    %61 = vector.extract_strided_slice %4 {offsets = [0, 247], sizes = [4, 256], strides = [1, 1]} : vector<4x512xf32> to vector<4x256xf32>
    %c0_31 = arith.constant 0 : index
    %c0_32 = arith.constant 0 : index
    %62 = vector.load %arg7[%c0_31, %c0_32] : memref<9x256xf32, #tpu.memory_space<vmem>>, vector<1x256xf32>
    %63 = vector.broadcast %62 : vector<1x256xf32> to vector<4x256xf32>
    %64 = arith.mulf %61, %63 : vector<4x256xf32>
    %65 = arith.truncf %64 : vector<4x256xf32> to vector<4x256xbf16>
    %c36 = arith.constant 36 : index
    %c0_33 = arith.constant 0 : index
    %66 = vector.load %arg9[%c36, %c0_33] : memref<108x256xbf16, #tpu.memory_space<vmem>>, vector<4x256xbf16>
    tpu.vector_store %arg9[%c36, %c0_33], %65 {strides = array<i32>} : memref<108x256xbf16, #tpu.memory_space<vmem>>, vector<4x256xbf16>,
    %67 = vector.extract_strided_slice %4 {offsets = [0, 248], sizes = [4, 256], strides = [1, 1]} : vector<4x512xf32> to vector<4x256xf32>
    %c1_34 = arith.constant 1 : index
    %c0_35 = arith.constant 0 : index
    %68 = vector.load %arg7[%c1_34, %c0_35] : memref<9x256xf32, #tpu.memory_space<vmem>>, vector<1x256xf32>
    %69 = vector.broadcast %68 : vector<1x256xf32> to vector<4x256xf32>
    %70 = arith.mulf %67, %69 : vector<4x256xf32>
    %71 = arith.truncf %70 : vector<4x256xf32> to vector<4x256xbf16>
    %c40 = arith.constant 40 : index
    %c0_36 = arith.constant 0 : index
    %72 = vector.load %arg9[%c40, %c0_36] : memref<108x256xbf16, #tpu.memory_space<vmem>>, vector<4x256xbf16>
    tpu.vector_store %arg9[%c40, %c0_36], %71 {strides = array<i32>} : memref<108x256xbf16, #tpu.memory_space<vmem>>, vector<4x256xbf16>,
    %73 = vector.extract_strided_slice %4 {offsets = [0, 249], sizes = [4, 256], strides = [1, 1]} : vector<4x512xf32> to vector<4x256xf32>
    %c2_37 = arith.constant 2 : index
    %c0_38 = arith.constant 0 : index
    %74 = vector.load %arg7[%c2_37, %c0_38] : memref<9x256xf32, #tpu.memory_space<vmem>>, vector<1x256xf32>
    %75 = vector.broadcast %74 : vector<1x256xf32> to vector<4x256xf32>
    %76 = arith.mulf %73, %75 : vector<4x256xf32>
    %77 = arith.truncf %76 : vector<4x256xf32> to vector<4x256xbf16>
    %c44 = arith.constant 44 : index
    %c0_39 = arith.constant 0 : index
    %78 = vector.load %arg9[%c44, %c0_39] : memref<108x256xbf16, #tpu.memory_space<vmem>>, vector<4x256xbf16>
    tpu.vector_store %arg9[%c44, %c0_39], %77 {strides = array<i32>} : memref<108x256xbf16, #tpu.memory_space<vmem>>, vector<4x256xbf16>,
    %79 = vector.extract_strided_slice %4 {offsets = [0, 255], sizes = [4, 256], strides = [1, 1]} : vector<4x512xf32> to vector<4x256xf32>
    %c3_40 = arith.constant 3 : index
    %c0_41 = arith.constant 0 : index
    %80 = vector.load %arg7[%c3_40, %c0_41] : memref<9x256xf32, #tpu.memory_space<vmem>>, vector<1x256xf32>
    %81 = vector.broadcast %80 : vector<1x256xf32> to vector<4x256xf32>
    %82 = arith.mulf %79, %81 : vector<4x256xf32>
    %83 = arith.truncf %82 : vector<4x256xf32> to vector<4x256xbf16>
    %c48 = arith.constant 48 : index
    %c0_42 = arith.constant 0 : index
    %84 = vector.load %arg9[%c48, %c0_42] : memref<108x256xbf16, #tpu.memory_space<vmem>>, vector<4x256xbf16>
    tpu.vector_store %arg9[%c48, %c0_42], %83 {strides = array<i32>} : memref<108x256xbf16, #tpu.memory_space<vmem>>, vector<4x256xbf16>,
    %85 = vector.extract_strided_slice %4 {offsets = [0, 256], sizes = [4, 256], strides = [1, 1]} : vector<4x512xf32> to vector<4x256xf32>
    %86 = arith.truncf %85 : vector<4x256xf32> to vector<4x256xbf16>
    %c52 = arith.constant 52 : index
    %c0_43 = arith.constant 0 : index
    %87 = vector.load %arg9[%c52, %c0_43] : memref<108x256xbf16, #tpu.memory_space<vmem>>, vector<4x256xbf16>
    tpu.vector_store %arg9[%c52, %c0_43], %86 {strides = array<i32>} : memref<108x256xbf16, #tpu.memory_space<vmem>>, vector<4x256xbf16>,
    %88 = vector.extract_strided_slice %9 {offsets = [0, 1], sizes = [4, 256], strides = [1, 1]} : vector<4x512xf32> to vector<4x256xf32>
    %c5_44 = arith.constant 5 : index
    %c0_45 = arith.constant 0 : index
    %89 = vector.load %arg7[%c5_44, %c0_45] : memref<9x256xf32, #tpu.memory_space<vmem>>, vector<1x256xf32>
    %90 = vector.broadcast %89 : vector<1x256xf32> to vector<4x256xf32>
    %91 = arith.mulf %88, %90 : vector<4x256xf32>
    %92 = arith.truncf %91 : vector<4x256xf32> to vector<4x256xbf16>
    %c56 = arith.constant 56 : index
    %c0_46 = arith.constant 0 : index
    %93 = vector.load %arg9[%c56, %c0_46] : memref<108x256xbf16, #tpu.memory_space<vmem>>, vector<4x256xbf16>
    tpu.vector_store %arg9[%c56, %c0_46], %92 {strides = array<i32>} : memref<108x256xbf16, #tpu.memory_space<vmem>>, vector<4x256xbf16>,
    %94 = vector.extract_strided_slice %9 {offsets = [0, 7], sizes = [4, 256], strides = [1, 1]} : vector<4x512xf32> to vector<4x256xf32>
    %c6_47 = arith.constant 6 : index
    %c0_48 = arith.constant 0 : index
    %95 = vector.load %arg7[%c6_47, %c0_48] : memref<9x256xf32, #tpu.memory_space<vmem>>, vector<1x256xf32>
    %96 = vector.broadcast %95 : vector<1x256xf32> to vector<4x256xf32>
    %97 = arith.mulf %94, %96 : vector<4x256xf32>
    %98 = arith.truncf %97 : vector<4x256xf32> to vector<4x256xbf16>
    %c60 = arith.constant 60 : index
    %c0_49 = arith.constant 0 : index
    %99 = vector.load %arg9[%c60, %c0_49] : memref<108x256xbf16, #tpu.memory_space<vmem>>, vector<4x256xbf16>
    tpu.vector_store %arg9[%c60, %c0_49], %98 {strides = array<i32>} : memref<108x256xbf16, #tpu.memory_space<vmem>>, vector<4x256xbf16>,
    %100 = vector.extract_strided_slice %9 {offsets = [0, 8], sizes = [4, 256], strides = [1, 1]} : vector<4x512xf32> to vector<4x256xf32>
    %c7_50 = arith.constant 7 : index
    %c0_51 = arith.constant 0 : index
    %101 = vector.load %arg7[%c7_50, %c0_51] : memref<9x256xf32, #tpu.memory_space<vmem>>, vector<1x256xf32>
    %102 = vector.broadcast %101 : vector<1x256xf32> to vector<4x256xf32>
    %103 = arith.mulf %100, %102 : vector<4x256xf32>
    %104 = arith.truncf %103 : vector<4x256xf32> to vector<4x256xbf16>
    %c64 = arith.constant 64 : index
    %c0_52 = arith.constant 0 : index
    %105 = vector.load %arg9[%c64, %c0_52] : memref<108x256xbf16, #tpu.memory_space<vmem>>, vector<4x256xbf16>
    tpu.vector_store %arg9[%c64, %c0_52], %104 {strides = array<i32>} : memref<108x256xbf16, #tpu.memory_space<vmem>>, vector<4x256xbf16>,
    %106 = vector.extract_strided_slice %9 {offsets = [0, 9], sizes = [4, 256], strides = [1, 1]} : vector<4x512xf32> to vector<4x256xf32>
    %c8_53 = arith.constant 8 : index
    %c0_54 = arith.constant 0 : index
    %107 = vector.load %arg7[%c8_53, %c0_54] : memref<9x256xf32, #tpu.memory_space<vmem>>, vector<1x256xf32>
    %108 = vector.broadcast %107 : vector<1x256xf32> to vector<4x256xf32>
    %109 = arith.mulf %106, %108 : vector<4x256xf32>
    %110 = arith.truncf %109 : vector<4x256xf32> to vector<4x256xbf16>
    %c68 = arith.constant 68 : index
    %c0_55 = arith.constant 0 : index
    %111 = vector.load %arg9[%c68, %c0_55] : memref<108x256xbf16, #tpu.memory_space<vmem>>, vector<4x256xbf16>
    tpu.vector_store %arg9[%c68, %c0_55], %110 {strides = array<i32>} : memref<108x256xbf16, #tpu.memory_space<vmem>>, vector<4x256xbf16>,
    %112 = vector.extract_strided_slice %9 {offsets = [0, 55], sizes = [4, 256], strides = [1, 1]} : vector<4x512xf32> to vector<4x256xf32>
    %c0_56 = arith.constant 0 : index
    %c0_57 = arith.constant 0 : index
    %113 = vector.load %arg7[%c0_56, %c0_57] : memref<9x256xf32, #tpu.memory_space<vmem>>, vector<1x256xf32>
    %114 = vector.broadcast %113 : vector<1x256xf32> to vector<4x256xf32>
    %115 = arith.mulf %112, %114 : vector<4x256xf32>
    %116 = arith.truncf %115 : vector<4x256xf32> to vector<4x256xbf16>
    %c72 = arith.constant 72 : index
    %c0_58 = arith.constant 0 : index
    %117 = vector.load %arg9[%c72, %c0_58] : memref<108x256xbf16, #tpu.memory_space<vmem>>, vector<4x256xbf16>
    tpu.vector_store %arg9[%c72, %c0_58], %116 {strides = array<i32>} : memref<108x256xbf16, #tpu.memory_space<vmem>>, vector<4x256xbf16>,
    %118 = vector.extract_strided_slice %9 {offsets = [0, 56], sizes = [4, 256], strides = [1, 1]} : vector<4x512xf32> to vector<4x256xf32>
    %c1_59 = arith.constant 1 : index
    %c0_60 = arith.constant 0 : index
    %119 = vector.load %arg7[%c1_59, %c0_60] : memref<9x256xf32, #tpu.memory_space<vmem>>, vector<1x256xf32>
    %120 = vector.broadcast %119 : vector<1x256xf32> to vector<4x256xf32>
    %121 = arith.mulf %118, %120 : vector<4x256xf32>
    %122 = arith.truncf %121 : vector<4x256xf32> to vector<4x256xbf16>
    %c76 = arith.constant 76 : index
    %c0_61 = arith.constant 0 : index
    %123 = vector.load %arg9[%c76, %c0_61] : memref<108x256xbf16, #tpu.memory_space<vmem>>, vector<4x256xbf16>
    tpu.vector_store %arg9[%c76, %c0_61], %122 {strides = array<i32>} : memref<108x256xbf16, #tpu.memory_space<vmem>>, vector<4x256xbf16>,
    %124 = vector.extract_strided_slice %9 {offsets = [0, 57], sizes = [4, 256], strides = [1, 1]} : vector<4x512xf32> to vector<4x256xf32>
    %c2_62 = arith.constant 2 : index
    %c0_63 = arith.constant 0 : index
    %125 = vector.load %arg7[%c2_62, %c0_63] : memref<9x256xf32, #tpu.memory_space<vmem>>, vector<1x256xf32>
    %126 = vector.broadcast %125 : vector<1x256xf32> to vector<4x256xf32>
    %127 = arith.mulf %124, %126 : vector<4x256xf32>
    %128 = arith.truncf %127 : vector<4x256xf32> to vector<4x256xbf16>
    %c80 = arith.constant 80 : index
    %c0_64 = arith.constant 0 : index
    %129 = vector.load %arg9[%c80, %c0_64] : memref<108x256xbf16, #tpu.memory_space<vmem>>, vector<4x256xbf16>
    tpu.vector_store %arg9[%c80, %c0_64], %128 {strides = array<i32>} : memref<108x256xbf16, #tpu.memory_space<vmem>>, vector<4x256xbf16>,
    %130 = vector.extract_strided_slice %9 {offsets = [0, 63], sizes = [4, 256], strides = [1, 1]} : vector<4x512xf32> to vector<4x256xf32>
    %c3_65 = arith.constant 3 : index
    %c0_66 = arith.constant 0 : index
    %131 = vector.load %arg7[%c3_65, %c0_66] : memref<9x256xf32, #tpu.memory_space<vmem>>, vector<1x256xf32>
    %132 = vector.broadcast %131 : vector<1x256xf32> to vector<4x256xf32>
    %133 = arith.mulf %130, %132 : vector<4x256xf32>
    %134 = arith.truncf %133 : vector<4x256xf32> to vector<4x256xbf16>
    %c84 = arith.constant 84 : index
    %c0_67 = arith.constant 0 : index
    %135 = vector.load %arg9[%c84, %c0_67] : memref<108x256xbf16, #tpu.memory_space<vmem>>, vector<4x256xbf16>
    tpu.vector_store %arg9[%c84, %c0_67], %134 {strides = array<i32>} : memref<108x256xbf16, #tpu.memory_space<vmem>>, vector<4x256xbf16>,
    %136 = vector.extract_strided_slice %9 {offsets = [0, 64], sizes = [4, 256], strides = [1, 1]} : vector<4x512xf32> to vector<4x256xf32>
    %137 = arith.truncf %136 : vector<4x256xf32> to vector<4x256xbf16>
    %c88 = arith.constant 88 : index
    %c0_68 = arith.constant 0 : index
    %138 = vector.load %arg9[%c88, %c0_68] : memref<108x256xbf16, #tpu.memory_space<vmem>>, vector<4x256xbf16>
    tpu.vector_store %arg9[%c88, %c0_68], %137 {strides = array<i32>} : memref<108x256xbf16, #tpu.memory_space<vmem>>, vector<4x256xbf16>,
    %139 = vector.extract_strided_slice %9 {offsets = [0, 65], sizes = [4, 256], strides = [1, 1]} : vector<4x512xf32> to vector<4x256xf32>
    %c5_69 = arith.constant 5 : index
    %c0_70 = arith.constant 0 : index
    %140 = vector.load %arg7[%c5_69, %c0_70] : memref<9x256xf32, #tpu.memory_space<vmem>>, vector<1x256xf32>
    %141 = vector.broadcast %140 : vector<1x256xf32> to vector<4x256xf32>
    %142 = arith.mulf %139, %141 : vector<4x256xf32>
    %143 = arith.truncf %142 : vector<4x256xf32> to vector<4x256xbf16>
    %c92 = arith.constant 92 : index
    %c0_71 = arith.constant 0 : index
    %144 = vector.load %arg9[%c92, %c0_71] : memref<108x256xbf16, #tpu.memory_space<vmem>>, vector<4x256xbf16>
    tpu.vector_store %arg9[%c92, %c0_71], %143 {strides = array<i32>} : memref<108x256xbf16, #tpu.memory_space<vmem>>, vector<4x256xbf16>,
    %145 = vector.extract_strided_slice %9 {offsets = [0, 71], sizes = [4, 256], strides = [1, 1]} : vector<4x512xf32> to vector<4x256xf32>
    %c6_72 = arith.constant 6 : index
    %c0_73 = arith.constant 0 : index
    %146 = vector.load %arg7[%c6_72, %c0_73] : memref<9x256xf32, #tpu.memory_space<vmem>>, vector<1x256xf32>
    %147 = vector.broadcast %146 : vector<1x256xf32> to vector<4x256xf32>
    %148 = arith.mulf %145, %147 : vector<4x256xf32>
    %149 = arith.truncf %148 : vector<4x256xf32> to vector<4x256xbf16>
    %c96 = arith.constant 96 : index
    %c0_74 = arith.constant 0 : index
    %150 = vector.load %arg9[%c96, %c0_74] : memref<108x256xbf16, #tpu.memory_space<vmem>>, vector<4x256xbf16>
    tpu.vector_store %arg9[%c96, %c0_74], %149 {strides = array<i32>} : memref<108x256xbf16, #tpu.memory_space<vmem>>, vector<4x256xbf16>,
    %151 = vector.extract_strided_slice %9 {offsets = [0, 72], sizes = [4, 256], strides = [1, 1]} : vector<4x512xf32> to vector<4x256xf32>
    %c7_75 = arith.constant 7 : index
    %c0_76 = arith.constant 0 : index
    %152 = vector.load %arg7[%c7_75, %c0_76] : memref<9x256xf32, #tpu.memory_space<vmem>>, vector<1x256xf32>
    %153 = vector.broadcast %152 : vector<1x256xf32> to vector<4x256xf32>
    %154 = arith.mulf %151, %153 : vector<4x256xf32>
    %155 = arith.truncf %154 : vector<4x256xf32> to vector<4x256xbf16>
    %c100 = arith.constant 100 : index
    %c0_77 = arith.constant 0 : index
    %156 = vector.load %arg9[%c100, %c0_77] : memref<108x256xbf16, #tpu.memory_space<vmem>>, vector<4x256xbf16>
    tpu.vector_store %arg9[%c100, %c0_77], %155 {strides = array<i32>} : memref<108x256xbf16, #tpu.memory_space<vmem>>, vector<4x256xbf16>,
    %157 = vector.extract_strided_slice %9 {offsets = [0, 73], sizes = [4, 256], strides = [1, 1]} : vector<4x512xf32> to vector<4x256xf32>
    %c8_78 = arith.constant 8 : index
    %c0_79 = arith.constant 0 : index
    %158 = vector.load %arg7[%c8_78, %c0_79] : memref<9x256xf32, #tpu.memory_space<vmem>>, vector<1x256xf32>
    %159 = vector.broadcast %158 : vector<1x256xf32> to vector<4x256xf32>
    %160 = arith.mulf %157, %159 : vector<4x256xf32>
    %161 = arith.truncf %160 : vector<4x256xf32> to vector<4x256xbf16>
    %c104 = arith.constant 104 : index
    %c0_80 = arith.constant 0 : index
    %162 = vector.load %arg9[%c104, %c0_80] : memref<108x256xbf16, #tpu.memory_space<vmem>>, vector<4x256xbf16>
    tpu.vector_store %arg9[%c104, %c0_80], %161 {strides = array<i32>} : memref<108x256xbf16, #tpu.memory_space<vmem>>, vector<4x256xbf16>,
    %c0_81 = arith.constant 0 : index
    %c0_82 = arith.constant 0 : index
    %163 = vector.load %arg5[%c0_81, %c0_82] : memref<32x108xbf16, #tpu.memory_space<vmem>>, vector<32x108xbf16>
    %c0_83 = arith.constant 0 : index
    %c0_84 = arith.constant 0 : index
    %164 = vector.load %arg9[%c0_83, %c0_84] : memref<108x256xbf16, #tpu.memory_space<vmem>>, vector<108x256xbf16>
    %cst = arith.constant dense<0.000000e+00> : vector<32x256xf32>
    %165 = tpu.matmul %163, %164, %cst {dimension_numbers = #tpu.dot_dimension_numbers<[1], [0], [0], [1], [0, 0, 1, 1], [], []>} : vector<32x108xbf16>, vector<108x256xbf16>, vector<32x256xf32> -> vector<32x256xf32>
    %c0_85 = arith.constant 0 : index
    %c0_86 = arith.constant 0 : index
    %166 = vector.load %arg6[%c0_85, %c0_86] : memref<32x1xf32, #tpu.memory_space<vmem>>, vector<32x1xf32>
    %167 = vector.broadcast %166 : vector<32x1xf32> to vector<32x256xf32>
    %168 = arith.addf %165, %167 : vector<32x256xf32>
    %cst_87 = arith.constant 0.000000e+00 : f32
    %169 = vector.broadcast %cst_87 : f32 to vector<32x256xf32>
    %170 = arith.maximumf %168, %169 : vector<32x256xf32>
    %c0_88 = arith.constant 0 : index
    %c0_89 = arith.constant 0 : index
    %c0_90 = arith.constant 0 : index
    %171 = vector.load %arg3[%c0_88, %c0_89, %c0_90] : memref<1x4x256xf32, #tpu.memory_space<vmem>>, vector<1x4x256xf32>
    %172 = vector.shape_cast %171 : vector<1x4x256xf32> to vector<4x256xf32>
    %173 = tpu.concatenate %172, %170 in 0 : vector<4x256xf32>, vector<32x256xf32> -> vector<36x256xf32>
    %c0_91 = arith.constant 0 : index
    %c0_92 = arith.constant 0 : index
    %c0_93 = arith.constant 0 : index
    %174 = vector.load %arg8[%c0_91, %c0_92, %c0_93] : memref<1x36x256xf32, #tpu.memory_space<vmem>>, vector<1x36x256xf32>
    %175 = vector.shape_cast %174 : vector<1x36x256xf32> to vector<36x256xf32>
    %176 = vector.shape_cast %173 : vector<36x256xf32> to vector<1x36x256xf32>
    tpu.vector_store %arg8[%c0_91, %c0_92, %c0_93], %176 {strides = array<i32>} : memref<1x36x256xf32, #tpu.memory_space<vmem>>, vector<1x36x256xf32>,
    return
  }
  func.func @transform_0(%arg0: i32, %arg1: i32) -> (i32, i32, i32) {
    %c0_i32 = arith.constant 0 : i32
    %c0_i32_0 = arith.constant 0 : i32
    return %arg0, %c0_i32, %arg1 : i32, i32, i32
  }
  func.func @transform_1(%arg0: i32, %arg1: i32) -> (i32, i32, i32) {
    %c1_i32 = arith.constant 1 : i32
    %0 = arith.addi %arg1, %c1_i32 : i32
    %c0_i32 = arith.constant 0 : i32
    %c0_i32_0 = arith.constant 0 : i32
    return %arg0, %c0_i32, %0 : i32, i32, i32
  }
  func.func @transform_2(%arg0: i32, %arg1: i32) -> (i32, i32, i32) {
    %c2_i32 = arith.constant 2 : i32
    %0 = arith.addi %arg1, %c2_i32 : i32
    %c0_i32 = arith.constant 0 : i32
    %c0_i32_0 = arith.constant 0 : i32
    return %arg0, %c0_i32, %0 : i32, i32, i32
  }
  func.func @transform_3(%arg0: i32, %arg1: i32) -> (i32, i32) {
    %c0_i32 = arith.constant 0 : i32
    %c0_i32_0 = arith.constant 0 : i32
    %c0_i32_1 = arith.constant 0 : i32
    return %c0_i32, %c0_i32_0 : i32, i32
  }
  func.func @transform_4(%arg0: i32, %arg1: i32) -> (i32, i32) {
    %c0_i32 = arith.constant 0 : i32
    %c0_i32_0 = arith.constant 0 : i32
    %c0_i32_1 = arith.constant 0 : i32
    return %c0_i32, %c0_i32_0 : i32, i32
  }
  func.func @transform_5(%arg0: i32, %arg1: i32) -> (i32, i32) {
    %c0_i32 = arith.constant 0 : i32
    %c0_i32_0 = arith.constant 0 : i32
    %c0_i32_1 = arith.constant 0 : i32
    return %c0_i32, %c0_i32_0 : i32, i32
  }
  func.func @transform_6(%arg0: i32, %arg1: i32) -> (i32, i32, i32) {
    %c0_i32 = arith.constant 0 : i32
    %c0_i32_0 = arith.constant 0 : i32
    return %arg0, %c0_i32, %arg1 : i32, i32, i32
  }
}

</mosaic_0001>

<bundles_post_ra>
// kernel: down_forward.1
= control target key start
LH: loop header
LB: loop body
LE: loop exit
PB: predicated region body
PF: predicated region fallthrough
CT: control target
= control target key end

     0   :  { %s2487_s0 = inlined_call_operand.vmem [shape: f32[2,4,1024], index: 0, kind: input, shape index: {}, may-alias: {0,1,2}]   ;;  %s2488_s1 = inlined_call_operand.vmem [shape: f32[2,4,1024], index: 1, kind: input, shape index: {}, may-alias: {0,1,2}]   ;;  %s2489_s2 = inlined_call_operand.vmem [shape: f32[2,4,1024], index: 2, kind: input, shape index: {}, may-alias: {0,1,2}]   ;;  %s2490_s3 = inlined_call_operand.vmem [shape: bf16[32,108], index: 3, kind: input, shape index: {}]   ;;  %s2491_s4 = inlined_call_operand.vmem [shape: f32[32,1], index: 4, kind: input, shape index: {}]   ;;  %s2492_s5 = inlined_call_operand.vmem [shape: f32[9,256], index: 5, kind: input, shape index: {}]   ;;  %s2493_s6 = inlined_call_operand.vmem [shape: f32[2,36,512], index: 6, kind: output, shape index: {}]  }
   0x1   :  { %2527 = sst [smem:[#allocation6_spill]] %s2487_s0 }
   0x2   :  { %2528 = sst [smem:[#allocation7_spill]] %s2488_s1 }
   0x3   :  { %s1895_s21 = smov 0   ;;  %s1897_s22 = smov 0  }
   0x4   :  { %s1899_s23 = smov 0   ;;  %s1901_s24 = smov 0  }
   0x5   :  { %s1903_s25 = smov 0   ;;  %s1905_s26 = smov 0  }
   0x6   :  { %s1907_s27 = smov 0  }
   0x7 LB: > { %s25_s28 = sadd.s32 1, %s1832_s25  ;;  %s28_s29 = sadd.s32 1, %s1836_s26  ;;  %s1840_s27 = sphi %s1907_s27, %s16_s27   ;;  %s1836_s26 = sphi %s1905_s26, %s2558_s26   ;;  %s1832_s25 = sphi %s1903_s25, %s2557_s25   ;;  %s1828_s24 = sphi %s1901_s24, %s2556_s24   ;;  %s1824_s23 = sphi %s1899_s23, %s2555_s23   ;;  %s1820_s22 = sphi %s1897_s22, %s2554_s22   ;;  %s1816_s21 = sphi %s1895_s21, %s2553_s21  }
   0x8   : > { %p26_p0 = scmp.ge.s32.totalorder %s25_s28, 2  ;;  %s1566_s30 = sadd.s32 4294967295, %s1840_s27  }
   0x9   : > { %p198_p1 = scmp.ne.s32.totalorder %s1820_s22, %s1816_s21  ;;  %p199_p2 = scmp.eq.s32.totalorder %s1566_s30, 3 }
   0xa   : > { %s2560_s28 = smov (%p26_p0, %s25_s28), 0  ;;  %s2562_s29 = smov (!%p26_p0, %s28_s29), %s1836_s26 }
   0xb   : > { %2529 = sst [smem:[#allocation4_spill]] %s2560_s28  ;;  %s184_s7 = ssub.s32 %s1832_s25, %s2560_s28 }
   0xc   : > { %p30_p3 = scmp.ge.s32.totalorder %s2562_s29, 2  ;;  %p1570_p4 = scmp.ge.s32.totalorder %s1840_s27, 1 }
   0xd   : > { %p1941_p5 = por %p199_p2, %p198_p1  ;;  %p275_p6 = scmp.lt.s32.totalorder %s1840_s27, 5 }
   0xe   : > { %s2564_s29 = smov (%p30_p3, %s2562_s29), 0  ;;  %s188_s11 = sadd.s32 1, %s1820_s22 }
   0xf   : > { %2531 = sst [smem:[#allocation5_spill]] %s2564_s29  ;;  %p276_p7 = pnand %p1570_p4, %p275_p6 }
  0x10   : > { %s183_s9 = ssub.s32 %s1836_s26, %s2564_s29  ;;  %s2494_s17 = smov (!%p276_p7), 63  }
  0x11   : > { %s185_s10 = sor.u32 %s184_s7, %s183_s9  ;;  %279 = sbr.rel (%p276_p7) target bundleno = 623 (0x26f), region = 44 }
  0x12   : > { %p186_p8 = scmp.eq.s32.totalorder %s185_s10, 0  ;;  %s2500_s20 = smov (!%p276_p7), 55  }
  0x13   : > { %s1969_s9 = sshll.u32 (!%p276_p7), %s1824_s23, 1  ;;  %p329_p9 = scmp.lt.s32.totalorder (!%p276_p7), %s1828_s24, 1 }
  0x14   : > { %s1952_s12 = scalar_select %p186_p8, %s1820_s22, %s188_s11  }
  0x15   : > { %p331_p10 = scmp.lt.s32.totalorder (!%p276_p7), %s1969_s9, 7  ;;  %s2496_s10 = smov (!%p276_p7), 56  }
  0x16   : > { %v1582_v0 = vld [vmem:[%s2492_s5 + $0x3] ss:$8 sm:$0x3]  ;;  %v386_v2 = vld [vmem:[%s2492_s5] ss:$8 sm:$0x3] }
  0x17   : > { %v488_v1 = vperm.slane %v1582_v0, 1  ;;  %v388_v3 = vperm.slane %v386_v2, 0  ;;  %v1580_v4 = vld [vmem:[%s2492_s5 + $0x1] ss:$8 sm:$0x3]  ;;  %s1674_s11 = sadd.s32 2, %s1969_s9 }
  0x18   : > { %v421_v5 = vperm.slane %v1580_v4, 0  ;;  %v1598_v6 = vld [vmem:[%s2492_s5 + $0x6] ss:$8 sm:$0x3]  ;;  %s330_s13 = scalar_select %p329_p9, %s1828_s24, 1  ;;  %v389_v8 = vperm.slane %v386_v2, 1 }
  0x19   : > { %491 = vrot.lane.b32.xlu1 %v488_v1, %s2494_s17  ;;  %390 = vrot.lane.b32.xlu0 %v388_v3, %s2500_s20  ;;  %v1093_v7 = vperm.slane %v1598_v6, 0  ;;  %s332_s14 = scalar_select %p331_p10, %s1969_s9, 7  ;;  %v422_v9 = vperm.slane %v1580_v4, 1  ;;  %v1581_v10 = vld [vmem:[%s2492_s5 + $0x2] ss:$8 sm:$0x3] }
  0x1a   : > { %423 = vrot.lane.b32.xlu2 %v421_v5, %s2496_s10  ;;  %s1977_s15 = sshll.u32 %s330_s13, 3  ;;  %p342_p11 = scmp.lt.s32.totalorder %s1674_s11, 7  ;;  %v456_v12 = vperm.slane %v1581_v10, 1  ;;  %v455_v13 = vperm.slane %v1581_v10, 0  ;;  %v487_v16 = vperm.slane %v1582_v0, 0  ;;  %v1094_v23 = vperm.slane %v1598_v6, 1 }
  0x1b   : > { %s334_s23 = sadd.s32 %s1977_s15, %s332_s14  ;;  %s2498_s16 = smov 71   ;;  %v1599_v17 = vld [vmem:[%s2492_s5 + $0x7] ss:$8 sm:$0x3]  ;;  %vm427_vm0 = vcmask 457728   ;;  %vm394_vm1 = vcmask 449536  }
  0x1c   : > { %s1573_s18 = sshll.u32 %s334_s23, 2  ;;  %s2532_s0 = sld [smem:[#allocation6_spill]]  ;;  %v1122_v18 = vperm.slane %v1599_v17, 0  ;;  %v1123_v21 = vperm.slane %v1599_v17, 1  ;;  %vm461_vm2 = vcmask 465920   ;;  %vm493_vm3 = vcmask 515072  }
  0x1d   : > { %s2566_s11 = smov (!%p342_p11, %s1674_s11), 7  ;;  %s2533_s13 = smov 56   ;;  %v1600_v22 = vld [vmem:[%s2492_s5 + $0x10] ss:$8 sm:$0x3]  ;;  %vm480_vm4 = vcmask 580608  }
  0x1e   : > { %s345_s14 = sadd.s32 %s1977_s15, %s2566_s11  ;;  %s2534_s1 = sld [smem:[#allocation7_spill]]  ;;  %v1154_v24 = vperm.slane %v1600_v22, 1  ;;  %v1153_v25 = vperm.slane %v1600_v22, 0  ;;  %v1596_v26 = vld [vmem:[%s2492_s5 + $0x3] ss:$8 sm:$0x3] }
  0x1f   : > { %s1576_s23 = sshll.u32 %s345_s14, 2  ;;  %s2503_s17 = smov 57   ;;  %v1597_v27 = vld [vmem:[%s2492_s5 + $0x5] ss:$8 sm:$0x3]  ;;  %v1017_v28 = vperm.slane %v1596_v26, 0 }
  0x20   : > { %s1676_s10 = sadd.s32 4, %s1969_s9  ;;  %s2507_s19 = smov 72   ;;  %v1062_v29 = vperm.slane %v1597_v27, 0  ;;  %v1018_v30 = vperm.slane %v1596_v26, 1  ;;  %v1063_v32 = vperm.slane %v1597_v27, 1  ;;  %vm448_vm5 = vcmask 588800  }
  0x21   : > { %1095 = vrot.lane.b32.xlu1 %v1093_v7, %s2498_s16  ;;  %392 = vrot.lane.b32.xlu0 %v389_v8, %s2500_s20  ;;  %p354_p12 = scmp.lt.s32.totalorder %s1676_s10, 7  ;;  %s2505_s30 = smov 64   ;;  %v1595_v31 = vld [vmem:[%s2492_s5 + $0x2] ss:$8 sm:$0x3]  ;;  %vm514_vm6 = vcmask 531456  }
  0x22   : > { %s336_s7 = scalar_lea.vmem %s2532_s0, %s1573_s18  ;;  %425 = vrot.lane.b32.xlu2 %v422_v9, %s2533_s13  ;;  %s2535_s18 = smov 63   ;;  %v989_v33 = vperm.slane %v1595_v31, 1  ;;  %v988_v34 = vperm.slane %v1595_v31, 0  ;;  %v1593_v35 = vld [vmem:[%s2492_s5 + $0x10] ss:$8 sm:$0x3] }
  0x23   : > { %v364_v11 = vld [vmem:[%s336_s7] sm:$0xff]  ;;  %s2568_s10 = smov (!%p354_p12, %s1676_s10), 7  ;;  %s2509_s11 = smov 73   ;;  %v895_v37 = vperm.slane %v1593_v35, 0  ;;  %v896_v39 = vperm.slane %v1593_v35, 1  ;;  %vm414_vm7 = vcmask 596992  }
  0x24   : > { %367 = vst [vmem:[#allocation1] ss:$2 sm:$0xff] %v364_v11  ;;  %s1993_s29 = scalar_lea.vmem %s2534_s1, %s1576_s23  ;;  %s2536_s23 = smov 71   ;;  %v1594_v36 = vld [vmem:[%s2492_s5 + $0x1] ss:$8 sm:$0x3] }
  0x25   : > { %v1996_v14 = vld [vmem:[%s1993_s29] sm:$0xff]  ;;  %s2511_s7 = smov 65   ;;  %v957_v38 = vperm.slane %v1594_v36, 0  ;;  %v958_v41 = vperm.slane %v1594_v36, 1  ;;  %s2515_s14 = smov 7   ;;  %vm725_vm8 = vcmask 64512  }
  0x26   : > { %v1592_v40 = vld [vmem:[%s2492_s5 + $0x7] ss:$8 sm:$0x3]  ;;  %v926_v44 = vld [vmem:[%s2492_s5] ss:$8 sm:$0x3]  ;;  %s2540_s16 = sadd.s32 %s1977_s15, %s2568_s10 }
  0x27   : > { %v865_v42 = vperm.slane %v1592_v40, 1  ;;  %v864_v43 = vperm.slane %v1592_v40, 0  ;;  %v1591_v45 = vld [vmem:[%s2492_s5 + $0x6] ss:$8 sm:$0x3]  ;;  %v928_v46 = vperm.slane %v926_v44, 0 }
  0x28   : > { %v831_v47 = vperm.slane %v1591_v45, 0  ;;  %v929_v48 = vperm.slane %v926_v44, 1  ;;  %v832_v49 = vperm.slane %v1591_v45, 1  ;;  %v1589_v50 = vld [vmem:[%s2492_s5 + $0x3] ss:$8 sm:$0x3] }
  0x29   : > { %459 = vrot.lane.b32.xlu0 %v456_v12, %s2503_s17  ;;  %v765_v51 = vperm.slane %v1589_v50, 1  ;;  %v764_v53 = vperm.slane %v1589_v50, 0  ;;  %s2519_s0 = smov 127   ;;  %v1590_v54 = vld [vmem:[%s2492_s5 + $0x5] ss:$8 sm:$0x3] }
  0x2a   : > { %457 = vrot.lane.b32.xlu2 %v455_v13, %s2503_s17  ;;  %s2537_s17 = smov 57   ;;  %v665_v55 = vld [vmem:[%s2492_s5] ss:$8 sm:$0x3]  ;;  %v800_v56 = vperm.slane %v1590_v54, 0  ;;  %v801_v58 = vperm.slane %v1590_v54, 1 }
  0x2b   : > { %v1999_v15 = vld.sshfl [vmem:[#allocation1 + $0x8] sm:$0xff pattern:$0x75316420]  ;;  %v667_v57 = vperm.slane %v665_v55, 0  ;;  %v668_v60 = vperm.slane %v665_v55, 1  ;;  %s2541_s15 = smov 65  }
  0x2c   : > { %371 = vst [vmem:[#allocation1] ss:$2 sm:$0xff] %v1996_v14  ;;  %v1588_v61 = vld [vmem:[%s2492_s5 + $0x2] ss:$8 sm:$0x3]  ;;  %vm694_vm9 = vcmask 72704  }
  0x2d   : > { %v732_v62 = vperm.slane %v1588_v61, 1  ;;  %v1586_v63 = vld [vmem:[%s2492_s5 + $0x10] ss:$8 sm:$0x3]  ;;  %v731_v0 = vperm.slane %v1588_v61, 0  ;;  %vm789_vm10 = vcmask 7168  }
  0x2e   : > { %v636_v2 = vperm.slane %v1586_v63, 0  ;;  %vm673_vm11 = vcmask 973824   ;;  %vm2526_vm12 = vcmask 56320   ;;  %vm770_vm13 = vcmask 1039360   ;;  %s2548_s20 = smov 8  }
  0x2f   : > { %vm412_vm14 = vcmask 1043456   ;;  %vm737_vm15 = vcmask 990208  }
  0x31   : > { %489 = vrot.lane.b32.xlu0 %v487_v16, %s2535_s18 }
  0x32   : > { %1124 = vrot.lane.b32.xlu2 %v1122_v18, %s2507_s19 }
  0x33   : > { %v2012_v19 = vld.sshfl [vmem:[#allocation1] sm:$0xff pattern:$0x75316420]  ;;  %v2067_v52 = vld.sshfl [vmem:[#allocation1 + $0x8] sm:$0xff pattern:$0x75316420] }
  0x34   : > { %v518_v20 = vpack.c.bf16 %v2012_v19, %v1999_v15  ;;  %377 = vst [vmem:[#allocation1] ss:$2 sm:$0xff] %v1996_v14 }
  0x36   : > { %522 = vrot.lane.b32.xlu1 %v518_v20, %s2505_s30  ;;  %s1579_s30 = sshll.u32 %s2540_s16, 2 }
  0x37   : > { %s359_s28 = scalar_lea.vmem %s2489_s2, %s1579_s30  ;;  %s1858_s30 = smov 120  }
  0x38   : > { %v376_v9 = vld [vmem:[%s359_s28] sm:$0xff]  ;;  %s2542_s28 = smov 72  }
  0x39   : > { %1126 = vrot.lane.b32.xlu0 %v1123_v21, %s2507_s19  ;;  %s2513_s19 = smov 9  }
  0x3a   : > { %1097 = vrot.lane.b32.xlu2 %v1094_v23, %s2536_s23 }
  0x3b   : > { %v2098_v4 = vld.sshfl [vmem:[#allocation1] sm:$0xff pattern:$0x75316420]  ;;  %v2102_v10 = vld.sshfl [vmem:[#allocation1 + $0x8] sm:$0xff pattern:$0x75316420] }
  0x3c   : > { %383 = vst [vmem:[#allocation1] ss:$2 sm:$0xff] %v376_v9  ;;  %v1584_v9 = vld [vmem:[%s2492_s5 + $0x6] ss:$8 sm:$0x3] }
  0x3e   : > { %1157 = vrot.lane.b32.xlu1 %v1154_v24, %s2509_s11 }
  0x41   : > { %1155 = vrot.lane.b32.xlu0 %v1153_v25, %s2509_s11  ;;  %s2517_s11 = smov 8  }
  0x42   : > { %1019 = vrot.lane.b32.xlu2 %v1017_v28, %s2535_s18 }
  0x46   : > { %1064 = vrot.lane.b32.xlu1 %v1062_v29, %s2511_s7 }
  0x49   : > { %1021 = vrot.lane.b32.xlu0 %v1018_v30, %s2535_s18  ;;  %v637_v30 = vperm.slane %v1586_v63, 1 }
  0x4a   : > { %1066 = vrot.lane.b32.xlu2 %v1063_v32, %s2511_s7  ;;  %s2538_s7 = smov 55  }
  0x4e   : > { %992 = vrot.lane.b32.xlu1 %v989_v33, %s2537_s17 }
  0x51   : > { %990 = vrot.lane.b32.xlu0 %v988_v34, %s2537_s17 }
  0x52   : > { %897 = vrot.lane.b32.xlu2 %v895_v37, %s2513_s19  ;;  %v1583_v37 = vld [vmem:[%s2492_s5 + $0x5] ss:$8 sm:$0x3] }
  0x56   : > { %959 = vrot.lane.b32.xlu1 %v957_v38, %s2533_s13 }
  0x59   : > { %899 = vrot.lane.b32.xlu0 %v896_v39, %s2513_s19  ;;  %s2521_s19 = smov 1  }
  0x5a   : > { %961 = vrot.lane.b32.xlu2 %v958_v41, %s2533_s13 }
  0x5e   : > { %868 = vrot.lane.b32.xlu1 %v865_v42, %s2517_s11 }
  0x61   : > { %866 = vrot.lane.b32.xlu0 %v864_v43, %s2517_s11  ;;  %s1857_s11 = smov 121   ;;  %v536_v43 = vperm.slane %v1583_v37, 0 }
  0x62   : > { %930 = vrot.lane.b32.xlu2 %v928_v46, %s2538_s7 }
  0x66   : > { %833 = vrot.lane.b32.xlu1 %v831_v47, %s2515_s14 }
  0x69   : > { %932 = vrot.lane.b32.xlu0 %v929_v48, %s2538_s7 }
  0x6a   : > { %835 = vrot.lane.b32.xlu2 %v832_v49, %s2515_s14  ;;  %s2523_s14 = smov 119   ;;  %v1585_v49 = vld [vmem:[%s2492_s5 + $0x7] ss:$8 sm:$0x3] }
  0x6b   : > { %v603_v54 = vperm.slane %v1585_v49, 1 }
  0x6e   : > { %768 = vrot.lane.b32.xlu1 %v765_v51, %s2519_s0 }
  0x71   : > { %766 = vrot.lane.b32.xlu0 %v764_v53, %s2519_s0  ;;  %s2539_s0 = smov 73   ;;  %v1587_v53 = vld [vmem:[%s2492_s5 + $0x1] ss:$8 sm:$0x3] }
  0x72   : > { %802 = vrot.lane.b32.xlu2 %v800_v56, %s2521_s19  ;;  %v701_v56 = vperm.slane %v1587_v53, 1  ;;  %v700_v63 = vperm.slane %v1587_v53, 0 }
  0x74   : > { %v424_v59 = vpop.permute.xlu2 %423 }
  0x75   : > { %v432_v11 = vmul.f32 %v424_v59, %v1999_v15 }
  0x76   : > { %669 = vrot.lane.b32.xlu1 %v667_v57, %s2523_s14 }
  0x79   : > { %804 = vrot.lane.b32.xlu0 %v801_v58, %s2521_s19  ;;  %s2545_s19 = smov 127  }
  0x7a   : > { %671 = vrot.lane.b32.xlu2 %v668_v60, %s2523_s14 }
  0x7c   : > { %v426_v1 = vpop.permute.xlu2 %425 }
  0x7d   : > { %v428_v6 = vsel %vm427_vm0, %v424_v59, %v426_v1  ;;  %v434_v44 = vmul.f32 %v426_v1, %v2067_v52  ;;  %v2150_v59 = vld.sshfl [vmem:[#allocation1] sm:$0xff pattern:$0x75316420] }
  0x7e   : > { %735 = vrot.lane.b32.xlu1 %v732_v62, %s1857_s11  ;;  %v433_v13 = vmul.f32 %v428_v6, %v2012_v19 }
  0x7f   : > { %v436_v48 = vpack.c.bf16 %v434_v44, %v434_v44 }
  0x80   : > { %v435_v17 = vpack.c.bf16 %v433_v13, %v432_v11  ;;  %v571_v13 = vperm.slane %v1584_v9, 1 }
  0x81   : > { %733 = vrot.lane.b32.xlu0 %v731_v0, %s1857_s11  ;;  %v440_v55 = vrot.slane %v436_v48, 6 }
  0x82   : > { %638 = vrot.lane.b32.xlu2 %v636_v2, %s2539_s0  ;;  %v439_v21 = vrot.slane %v435_v17, 6 }
  0x84   : > { %v458_v3 = vpop.permute.xlu2 %457 }
  0x85   : > { %v466_v34 = vmul.f32 %v458_v3, %v1999_v15 }
  0x8b   : > { %v492_v5 = vpop.permute.xlu1 %491  ;;  %v391_v8 = vpop.permute.xlu0 %390 }
  0x8c   : > { %v500_v7 = vmul.f32 %v492_v5, %v2067_v52  ;;  %v2106_v14 = vpop.permute.xlu2 %1124  ;;  %v399_v27 = vmul.f32 %v391_v8, %v1999_v15 }
  0x8d   : > { %v1132_v17 = vmul.f32 %v2106_v14, %v2098_v4 }
  0x8e   : > { %v502_v12 = vpack.c.bf16 %v500_v7, %v500_v7 }
  0x90   : > { %v506_v16 = vrot.slane %v502_v12, 6 }
  0x92   : > { %509 = vrot.lane.b32.xlu0 %v506_v16, %s2541_s15 }
  0x93   : > { %v393_v18 = vpop.permute.xlu0 %392  ;;  %v1096_v31 = vpop.permute.xlu1 %1095 }
  0x94   : > { %v401_v20 = vmul.f32 %v393_v18, %v2067_v52  ;;  %v395_v23 = vsel %vm394_vm1, %v391_v8, %v393_v18  ;;  %v2111_v24 = vpop.permute.xlu2 %1097  ;;  %v1103_v60 = vmul.f32 %v1096_v31, %v2098_v4  ;;  %v537_v8 = vperm.slane %v1583_v37, 1 }
  0x95   : > { %v400_v25 = vmul.f32 %v395_v23, %v2012_v19  ;;  %v1099_v58 = vsel %vm480_vm4, %v1096_v31, %v2111_v24 }
  0x96   : > { %v403_v22 = vpack.c.bf16 %v401_v20, %v401_v20  ;;  %v1104_v61 = vmul.f32 %v1099_v58, %v2102_v10 }
  0x97   : > { %v402_v33 = vpack.c.bf16 %v400_v25, %v399_v27  ;;  %v570_v25 = vperm.slane %v1584_v9, 0 }
  0x98   : > { %408 = vrot.lane.b32.xlu1 %v403_v22, %s2539_s0  ;;  %v1106_v2 = vpack.c.bf16 %v1104_v61, %v1103_v60 }
  0x9a   : > { %441 = vrot.lane.b32.xlu0 %v439_v21, %s2542_s28 }
  0x9b   : > { %v460_v26 = vpop.permute.xlu0 %459 }
  0x9c   : > { %v468_v28 = vmul.f32 %v460_v26, %v2067_v52  ;;  %v462_v29 = vsel %vm461_vm2, %v458_v3, %v460_v26  ;;  %v2124_v36 = vpop.permute.xlu2 %1019  ;;  %v602_v3 = vperm.slane %v1585_v49, 0 }
  0x9d   : > { %v467_v35 = vmul.f32 %v462_v29, %v2012_v19  ;;  %v1027_v44 = vmul.f32 %v2124_v36, %v2098_v4 }
  0x9e   : > { %v470_v32 = vpack.c.bf16 %v468_v28, %v468_v28 }
  0x9f   : > { %v469_v39 = vpack.c.bf16 %v467_v35, %v466_v34 }
  0xa0   : > { %406 = vrot.lane.b32.xlu1 %v402_v33, %s2539_s0  ;;  %475 = vrot.lane.b32.xlu2 %v470_v32, %s2536_s23 }
  0xa2   : > { %640 = vrot.lane.b32.xlu0 %v637_v30, %s2539_s0 }
  0xa3   : > { %v490_v38 = vpop.permute.xlu0 %489 }
  0xa4   : > { %v494_v40 = vsel %vm493_vm3, %v490_v38, %v492_v5  ;;  %v498_v41 = vmul.f32 %v490_v38, %v1999_v15  ;;  %v2141_v51 = vpop.permute.xlu2 %1066 }
  0xa5   : > { %v499_v42 = vmul.f32 %v494_v40, %v2012_v19 }
  0xa7   : > { %v501_v45 = vpack.c.bf16 %v499_v42, %v498_v41 }
  0xa8   : > { %v2133_v46 = vpop.permute.xlu1 %522  ;;  %473 = vrot.lane.b32.xlu1 %v469_v39, %s2536_s23 }
  0xa9   : > { %v505_v47 = vrot.slane %v501_v45, 6 }
  0xaa   : > { %538 = vrot.lane.b32.xlu0 %v536_v43, %s2541_s15 }
  0xab   : > { %507 = vrot.lane.b32.xlu2 %v505_v47, %s2541_s15  ;;  %v1127_v50 = vpop.permute.xlu0 %1126 }
  0xac   : > { %v1134_v0 = vmul.f32 %v1127_v50, %v2150_v59  ;;  %v2156_v1 = vpop.permute.xlu2 %897  ;;  %v1128_v12 = vsel %vm448_vm5, %v2106_v14, %v1127_v50  ;;  %v1105_v14 = vmul.f32 %v2111_v24, %v2150_v59 }
  0xad   : > { %v1133_v18 = vmul.f32 %v1128_v12, %v2102_v10  ;;  %v1046_v12 = vpack.c.bf16 %v2102_v10, %v2098_v4 }
  0xae   : > { %v1136_v6 = vpack.c.bf16 %v1134_v0, %v1134_v0  ;;  %v1107_v34 = vpack.c.bf16 %v1105_v14, %v1105_v14 }
  0xaf   : > { %v1135_v28 = vpack.c.bf16 %v1133_v18, %v1132_v17 }
  0xb0   : > { %v1158_v57 = vpop.permute.xlu1 %1157  ;;  %443 = vrot.lane.b32.xlu1 %v440_v55, %s2542_s28  ;;  %v1140_v11 = vrot.slane %v1136_v6, 6 }
  0xb1   : > { %v1139_v31 = vrot.slane %v1135_v28, 6  ;;  %v1165_v24 = vmul.f32 %v1158_v57, %v2150_v59 }
  0xb2   : > { %606 = vrot.lane.b32.xlu0 %v603_v54, %s2542_s28 }
  0xb3   : > { %704 = vrot.lane.b32.xlu2 %v701_v56, %s1858_s30  ;;  %v1156_v62 = vpop.permute.xlu0 %1155  ;;  %v1167_v43 = vpack.c.bf16 %v1165_v24, %v1165_v24 }
  0xb4   : > { %v2166_v16 = vpop.permute.xlu2 %961  ;;  %v1159_v40 = vsel %vm414_vm7, %v1156_v62, %v1158_v57  ;;  %v1163_v47 = vmul.f32 %v1156_v62, %v2098_v4 }
  0xb5   : > { %v1164_v48 = vmul.f32 %v1159_v40, %v2102_v10 }
  0xb7   : > { %v1166_v55 = vpack.c.bf16 %v1164_v48, %v1163_v47 }
  0xb8   : > { %v1065_v5 = vpop.permute.xlu1 %1064  ;;  %702 = vrot.lane.b32.xlu1 %v700_v63, %s1858_s30 }
  0xb9   : > { %v1068_v35 = vsel %vm514_vm6, %v1065_v5, %v2141_v51  ;;  %v1072_v41 = vmul.f32 %v1065_v5, %v2098_v4 }
  0xba   : > { %1110 = vrot.lane.b32.xlu0 %v1106_v2, %s2537_s17  ;;  %v1073_v42 = vmul.f32 %v1068_v35, %v2102_v10 }
  0xbb   : > { %604 = vrot.lane.b32.xlu2 %v602_v3, %s2542_s28  ;;  %v1022_v7 = vpop.permute.xlu0 %1021  ;;  %v1047_v3 = vpack.c.bf16 %v2150_v59, %v2150_v59 }
  0xbc   : > { %v1029_v26 = vmul.f32 %v1022_v7, %v2150_v59  ;;  %v931_v32 = vpop.permute.xlu2 %930  ;;  %v1023_v39 = vsel %vm493_vm3, %v2124_v36, %v1022_v7  ;;  %v1075_v49 = vpack.c.bf16 %v1073_v42, %v1072_v41 }
  0xbd   : > { %v1028_v45 = vmul.f32 %v1023_v39, %v2102_v10  ;;  %v938_v5 = vmul.f32 %v931_v32, %v2098_v4 }
  0xbe   : > { %v1031_v30 = vpack.c.bf16 %v1029_v26, %v1029_v26  ;;  %v1079_v57 = vrot.slane %v1075_v49, 6 }
  0xbf   : > { %v1030_v54 = vpack.c.bf16 %v1028_v45, %v1027_v44 }
  0xc0   : > { %540 = vrot.lane.b32.xlu1 %v537_v8, %s2541_s15  ;;  %v993_v20 = vpop.permute.xlu1 %992  ;;  %v1035_v38 = vrot.slane %v1031_v30, 6 }
  0xc1   : > { %v1034_v36 = vrot.slane %v1030_v54, 6  ;;  %v1000_v60 = vmul.f32 %v993_v20, %v2150_v59 }
  0xc2   : > { %1143 = vrot.lane.b32.xlu0 %v1140_v11, %s2533_s13  ;;  %v1074_v11 = vmul.f32 %v2141_v51, %v2150_v59 }
  0xc3   : > { %574 = vrot.lane.b32.xlu2 %v571_v13, %s2536_s23  ;;  %v991_v21 = vpop.permute.xlu0 %990  ;;  %v1002_v0 = vpack.c.bf16 %v1000_v60, %v1000_v60  ;;  %v969_v13 = vmul.f32 %v2166_v16, %v2150_v59 }
  0xc4   : > { %v998_v22 = vmul.f32 %v991_v21, %v2098_v4  ;;  %v994_v23 = vsel %vm461_vm2, %v991_v21, %v993_v20  ;;  %v2201_v53 = vpop.permute.xlu2 %835 }
  0xc5   : > { %v999_v27 = vmul.f32 %v994_v23, %v2102_v10  ;;  %v971_v23 = vpack.c.bf16 %v969_v13, %v969_v13 }
  0xc7   : > { %v1001_v29 = vpack.c.bf16 %v999_v27, %v998_v22  ;;  %v1076_v22 = vpack.c.bf16 %v1074_v11, %v1074_v11  ;;  %v975_v14 = vrot.slane %v971_v23, 6 }
  0xc8   : > { %572 = vrot.lane.b32.xlu1 %v570_v25, %s2536_s23  ;;  %v2185_v37 = vpop.permute.xlu1 %959 }
  0xc9   : > { %v967_v35 = vmul.f32 %v2185_v37, %v2098_v4 }
  0xca   : > { %1005 = vrot.lane.b32.xlu0 %v1001_v29, %s2536_s23  ;;  %v1080_v29 = vrot.slane %v1076_v22, 6 }
  0xcb   : > { %1141 = vrot.lane.b32.xlu2 %v1139_v31, %s2533_s13  ;;  %v900_v33 = vpop.permute.xlu0 %899  ;;  %v906_v31 = vmul.f32 %v2156_v1, %v2098_v4 }
  0xcc   : > { %v803_v63 = vpop.permute.xlu2 %802  ;;  %v908_v51 = vmul.f32 %v900_v33, %v2150_v59  ;;  %v902_v26 = vsel %vm694_vm9, %v2156_v1, %v900_v33 }
  0xcd   : > { %v811_v39 = vmul.f32 %v803_v63, %v2098_v4 }
  0xce   : > { %v910_v30 = vpack.c.bf16 %v908_v51, %v908_v51 }
  0xd0   : > { %1112 = vrot.lane.b32.xlu1 %v1107_v34, %s2537_s17  ;;  %v869_v56 = vpop.permute.xlu1 %868  ;;  %v963_v34 = vsel %vm427_vm0, %v2185_v37, %v2166_v16  ;;  %v914_v24 = vrot.slane %v910_v30, 6  ;;  %v844_v37 = vmul.f32 %v2201_v53, %v2150_v59 }
  0xd1   : > { %v877_v58 = vmul.f32 %v869_v56, %v2150_v59 }
  0xd2   : > { %1038 = vrot.lane.b32.xlu0 %v1035_v38, %s2541_s15  ;;  %v968_v38 = vmul.f32 %v963_v34, %v2102_v10  ;;  %v846_v45 = vpack.c.bf16 %v844_v37, %v844_v37 }
  0xd3   : > { %1172 = vrot.lane.b32.xlu2 %v1167_v43, %s2538_s7  ;;  %v867_v50 = vpop.permute.xlu0 %866  ;;  %v879_v62 = vpack.c.bf16 %v877_v58, %v877_v58 }
  0xd4   : > { %v871_v7 = vsel %vm725_vm8, %v867_v50, %v869_v56  ;;  %v875_v17 = vmul.f32 %v867_v50, %v2098_v4  ;;  %v2229_v21 = vpop.permute.xlu2 %671  ;;  %v970_v41 = vpack.c.bf16 %v968_v38, %v967_v35  ;;  %v519_v38 = vpack.c.bf16 %v2067_v52, %v2067_v52 }
  0xd5   : > { %v876_v18 = vmul.f32 %v871_v7, %v2102_v10 }
  0xd6   : > { %v974_v47 = vrot.slane %v970_v41, 6 }
  0xd7   : > { %v878_v25 = vpack.c.bf16 %v876_v18, %v875_v17 }
  0xd8   : > { %1170 = vrot.lane.b32.xlu1 %v1166_v55, %s2538_s7  ;;  %v2216_v8 = vpop.permute.xlu1 %833  ;;  %v850_v55 = vrot.slane %v846_v45, 6 }
  0xda   : > { %1081 = vrot.lane.b32.xlu0 %v1079_v57, %s2535_s18 }
  0xdb   : > { %1036 = vrot.lane.b32.xlu2 %v1034_v36, %s2541_s15  ;;  %v933_v61 = vpop.permute.xlu0 %932  ;;  %s2543_s15 = smov 64   ;;  %v838_v36 = vsel %vm2526_vm12, %v2216_v8, %v2201_v53  ;;  %vm706_vm12 = vcmask 982016  }
  0xdc   : > { %v934_v2 = vsel %vm394_vm1, %v931_v32, %v933_v61  ;;  %v907_v32 = vmul.f32 %v902_v26, %v2102_v10  ;;  %v2254_v40 = vpop.permute.xlu2 %638  ;;  %v940_v49 = vmul.f32 %v933_v61, %v2150_v59 }
  0xdd   : > { %v939_v6 = vmul.f32 %v934_v2, %v2102_v10 }
  0xde   : > { %v909_v16 = vpack.c.bf16 %v907_v32, %v906_v31  ;;  %v942_v57 = vpack.c.bf16 %v940_v49, %v940_v49  ;;  %v647_v31 = vmul.f32 %v2254_v40, %v1999_v15 }
  0xdf   : > { %v941_v20 = vpack.c.bf16 %v939_v6, %v938_v5 }
  0xe0   : > { %1007 = vrot.lane.b32.xlu1 %v1002_v0, %s2536_s23  ;;  %v769_v28 = vpop.permute.xlu1 %768  ;;  %s2544_s23 = smov 119   ;;  %v913_v43 = vrot.slane %v909_v16, 6  ;;  %v843_v0 = vmul.f32 %v838_v36, %v2102_v10 }
  0xe1   : > { %v777_v56 = vmul.f32 %v769_v28, %v2067_v52 }
  0xe2   : > { %884 = vrot.lane.b32.xlu0 %v879_v62, %s1858_s30 }
  0xe3   : > { %1052 = vrot.lane.b32.xlu2 %v1047_v3, %s2543_s15  ;;  %v2219_v9 = vpop.permute.xlu0 %766  ;;  %v779_v2 = vpack.c.bf16 %v777_v56, %v777_v56 }
  0xe4   : > { %v771_v58 = vsel %vm770_vm13, %v2219_v9, %v769_v28  ;;  %v775_v53 = vmul.f32 %v2219_v9, %v1999_v15 }
  0xe5   : > { %v776_v3 = vmul.f32 %v771_v58, %v2012_v19 }
  0xe8   : > { %1050 = vrot.lane.b32.xlu1 %v1046_v12, %s2543_s15  ;;  %v670_v44 = vpop.permute.xlu1 %669 }
  0xe9   : > { %v674_v54 = vsel %vm673_vm11, %v670_v44, %v2229_v21  ;;  %v678_v60 = vmul.f32 %v670_v44, %v1999_v15 }
  0xea   : > { %945 = vrot.lane.b32.xlu0 %v941_v20, %s2539_s0  ;;  %v679_v61 = vmul.f32 %v674_v54, %v2012_v19 }
  0xeb   : > { %882 = vrot.lane.b32.xlu2 %v878_v25, %s1858_s30  ;;  %v2237_v27 = vpop.permute.xlu0 %804 }
  0xec   : > { %v807_v33 = vsel %vm789_vm10, %v803_v63, %v2237_v27  ;;  %v842_v63 = vmul.f32 %v2216_v8, %v2098_v4  ;;  %v681_v5 = vpack.c.bf16 %v679_v61, %v678_v60  ;;  %v778_v4 = vpack.c.bf16 %v776_v3, %v775_v53 }
  0xed   : > { %v812_v1 = vmul.f32 %v807_v33, %v2102_v10  ;;  %v813_v18 = vmul.f32 %v2237_v27, %v2150_v59 }
  0xee   : > { %v845_v11 = vpack.c.bf16 %v843_v0, %v842_v63  ;;  %v685_v8 = vrot.slane %v681_v5, 6 }
  0xef   : > { %v814_v42 = vpack.c.bf16 %v812_v1, %v811_v39  ;;  %v815_v51 = vpack.c.bf16 %v813_v18, %v813_v18  ;;  %v680_v39 = vmul.f32 %v2229_v21, %v2067_v52 }
  0xf0   : > { %1083 = vrot.lane.b32.xlu1 %v1080_v29, %s2535_s18  ;;  %v2278_v62 = vpop.permute.xlu1 %735  ;;  %v849_v9 = vrot.slane %v845_v11, 6 }
  0xf1   : > { %v682_v16 = vpack.c.bf16 %v680_v39, %v680_v39 }
  0xf2   : > { %978 = vrot.lane.b32.xlu0 %v975_v14, %s2542_s28 }
  0xf3   : > { %917 = vrot.lane.b32.xlu2 %v914_v24, %s2544_s23  ;;  %v2261_v48 = vpop.permute.xlu0 %733 }
  0xf4   : > { %v742_v49 = vmul.f32 %v2261_v48, %v1999_v15 }
  0xf8   : > { %915 = vrot.lane.b32.xlu1 %v913_v43, %s2544_s23  ;;  %v738_v43 = vsel %vm737_vm15, %v2261_v48, %v2278_v62 }
  0xf9   : > { %v743_v54 = vmul.f32 %v738_v43, %v2012_v19 }
  0xfa   : > { %818 = vrot.lane.b32.xlu0 %v814_v42, %s2545_s19  ;;  %v2265_v50 = vpop.permute.xlu2 %475 }
  0xfb   : > { %976 = vrot.lane.b32.xlu2 %v974_v47, %s2542_s28  ;;  %s2546_s28 = smov 1   ;;  %v478_v41 = vrot.slane %v2265_v50, 4  ;;  %v686_v47 = vrot.slane %v682_v16, 6  ;;  %v745_v36 = vpack.c.bf16 %v743_v54, %v742_v49 }
  0xfd   : > { %v749_v63 = vrot.slane %v745_v36, 6 }
 0x100   : > { %947 = vrot.lane.b32.xlu1 %v942_v57, %s2539_s0  ;;  %s2547_s0 = smov 9  }
 0x102   : > { %853 = vrot.lane.b32.xlu0 %v850_v55, %s1857_s11 }
 0x103   : > { %784 = vrot.lane.b32.xlu2 %v779_v2, %s2546_s28 }
 0x104   : > { %v510_v6 = vpop.permute.xlu0 %509 }
 0x105   : > { %v512_v7 = vrot.slane %v510_v6, 4  ;;  %v508_v12 = vpop.permute.xlu2 %507  ;;  %v744_v6 = vmul.f32 %v2278_v62, %v2067_v52 }
 0x106   : > { %v511_v13 = vrot.slane %v508_v12, 4 }
 0x107   : > { %v746_v11 = vpack.c.bf16 %v744_v6, %v744_v6 }
 0x108   : > { %v513_v10 = vsel %vm412_vm14, %v511_v13, %v512_v7  ;;  %782 = vrot.lane.b32.xlu1 %v778_v4, %s2546_s28  ;;  %s325_s28 = sand.u32 1, %s1816_s21  }
 0x109   : > { %v515_v17 = vsel %vm514_vm6, %v508_v12, %v513_v10 }
 0x10a   : > { %687 = vrot.lane.b32.xlu0 %v685_v8, %s2547_s0  ;;  %517 = vst [vmem:[#allocation2 + $0x8] sm:$0xcc] %v515_v17  ;;  %v409_v20 = vpop.permute.xlu1 %408 }
 0x10b   : > { %851 = vrot.lane.b32.xlu2 %v849_v9, %s1857_s11  ;;  %v411_v29 = vrot.slane %v409_v20, 4  ;;  %s2549_s11 = smov 7   ;;  %v750_v20 = vrot.slane %v746_v11, 6 }
 0x10c   : > { %v442_v22 = vpop.permute.xlu0 %441 }
 0x10d   : > { %v705_v23 = vpop.permute.xlu2 %704  ;;  %v445_v55 = vrot.slane %v442_v22, 4 }
 0x10e   : > { %v713_v25 = vmul.f32 %v705_v23, %v2067_v52 }
 0x110   : > { %v715_v26 = vpack.c.bf16 %v713_v25, %v713_v25  ;;  %820 = vrot.lane.b32.xlu1 %v815_v51, %s2545_s19 }
 0x112   : > { %v407_v28 = vpop.permute.xlu1 %406  ;;  %720 = vrot.lane.b32.xlu0 %v715_v26, %s2548_s20 }
 0x113   : > { %v410_v14 = vrot.slane %v407_v28, 4 }
 0x114   : > { %v641_v30 = vpop.permute.xlu0 %640 }
 0x115   : > { %v643_v59 = vsel %vm414_vm7, %v2254_v40, %v641_v30  ;;  %v649_v27 = vmul.f32 %v641_v30, %v2067_v52  ;;  %v413_v32 = vsel %vm412_vm14, %v410_v14, %v411_v29  ;;  %v2305_v33 = vpop.permute.xlu2 %604 }
 0x116   : > { %v648_v34 = vmul.f32 %v643_v59, %v2012_v19  ;;  %v415_v35 = vsel %vm414_vm7, %v407_v28, %v413_v32 }
 0x117   : > { %v651_v24 = vpack.c.bf16 %v649_v27, %v649_v27  ;;  %417 = vst [vmem:[#allocation2] sm:$0x33] %v415_v35 }
 0x118   : > { %v650_v1 = vpack.c.bf16 %v648_v34, %v647_v31  ;;  %v613_v34 = vmul.f32 %v2305_v33, %v1999_v15 }
 0x119   : > { %656 = vrot.lane.b32.xlu2 %v651_v24, %s2538_s7 }
 0x11a   : > { %654 = vrot.lane.b32.xlu1 %v650_v1, %s2538_s7  ;;  %v474_v40 = vpop.permute.xlu1 %473  ;;  %524 = vrot.lane.b32.xlu0 %v519_v38, %s2543_s15 }
 0x11b   : > { %v477_v37 = vrot.slane %v474_v40, 4 }
 0x11c   : > { %v539_v42 = vpop.permute.xlu0 %538 }
 0x11d   : > { %v479_v21 = vsel %vm412_vm14, %v477_v37, %v478_v41  ;;  %v575_v44 = vpop.permute.xlu2 %574  ;;  %v547_v12 = vmul.f32 %v539_v42, %v1999_v15 }
 0x11e   : > { %v481_v45 = vsel %vm480_vm4, %v474_v40, %v479_v21  ;;  %v583_v27 = vmul.f32 %v575_v44, %v2067_v52 }
 0x11f   : > { %483 = vst [vmem:[#allocation2 + $0x8] sm:$0x33] %v481_v45 }
 0x120   : > { %v585_v1 = vpack.c.bf16 %v583_v27, %v583_v27 }
 0x122   : > { %689 = vrot.lane.b32.xlu1 %v686_v47, %s2547_s0  ;;  %v444_v50 = vpop.permute.xlu1 %443  ;;  %s1707_s0 = smul.u32 80, %s325_s28 }
 0x123   : > { %v446_v56 = vrot.slane %v444_v50, 4 }
 0x124   : > { %v607_v57 = vpop.permute.xlu0 %606  ;;  %s2430_s21 = scalar_lea.vmem [#allocation3], %s1707_s0 }
 0x125   : > { %v447_v58 = vsel %vm412_vm14, %v445_v55, %v446_v56  ;;  %v1142_v60 = vpop.permute.xlu2 %1141  ;;  %v609_v29 = vsel %vm448_vm5, %v2305_v33, %v607_v57  ;;  %v615_v31 = vmul.f32 %v607_v57, %v2067_v52 }
 0x126   : > { %v449_v61 = vsel %vm448_vm5, %v442_v22, %v447_v58  ;;  %v1145_v10 = vrot.slane %v1142_v60, 4  ;;  %v614_v35 = vmul.f32 %v609_v29, %v2012_v19 }
 0x127   : > { %451 = vst [vmem:[#allocation2] sm:$0xcc] %v449_v61  ;;  %v617_v40 = vpack.c.bf16 %v615_v31, %v615_v31 }
 0x128   : > { %v616_v41 = vpack.c.bf16 %v614_v35, %v613_v34 }
 0x12a   : > { %751 = vrot.lane.b32.xlu1 %v749_v63, %s2549_s11  ;;  %v703_v48 = vpop.permute.xlu1 %702  ;;  %v620_v49 = vrot.slane %v616_v41, 6 }
 0x12b   : > { %v707_v0 = vsel %vm706_vm12, %v703_v48, %v705_v23  ;;  %v711_v2 = vmul.f32 %v703_v48, %v1999_v15 }
 0x12c   : > { %v1111_v53 = vpop.permute.xlu0 %1110  ;;  %v712_v3 = vmul.f32 %v707_v0, %v2012_v19 }
 0x12d   : > { %v2331_v5 = vpop.permute.xlu2 %1172  ;;  %v1114_v37 = vrot.slane %v1111_v53, 4 }
 0x12e   : > { %v714_v7 = vpack.c.bf16 %v712_v3, %v711_v2  ;;  %v1175_v56 = vrot.slane %v2331_v5, 4 }
 0x130   : > { %718 = vrot.lane.b32.xlu2 %v714_v7, %s2548_s20 }
 0x132   : > { %v541_v13 = vpop.permute.xlu1 %540 }
 0x133   : > { %v543_v4 = vsel %vm514_vm6, %v539_v42, %v541_v13  ;;  %v549_v22 = vmul.f32 %v541_v13, %v2067_v52 }
 0x134   : > { %v1144_v8 = vpop.permute.xlu0 %1143  ;;  %v548_v17 = vmul.f32 %v543_v4, %v2012_v19 }
 0x135   : > { %v1146_v9 = vrot.slane %v1144_v8, 4  ;;  %v1037_v18 = vpop.permute.xlu2 %1036  ;;  %v551_v26 = vpack.c.bf16 %v549_v22, %v549_v22 }
 0x136   : > { %v550_v23 = vpack.c.bf16 %v548_v17, %v547_v12  ;;  %v1040_v33 = vrot.slane %v1037_v18, 4 }
 0x137   : > { %v1147_v62 = vsel %vm412_vm14, %v1145_v10, %v1146_v9  ;;  %v555_v24 = vrot.slane %v551_v26, 6 }
 0x138   : > { %v1148_v51 = vsel %vm427_vm0, %v1142_v60, %v1147_v62  ;;  %753 = vrot.lane.b32.xlu2 %v750_v20, %s2549_s11  ;;  %v554_v25 = vrot.slane %v550_v23, 6 }
 0x139   : > { %1150 = vst [vmem:[#allocation2 + $0x60] sm:$0xcc] %v1148_v51  ;;  %v793_v51 = vpack.c.bf16 %v2067_v52, %v2012_v19 }
 0x13a   : > { %v573_v28 = vpop.permute.xlu1 %572  ;;  %556 = vrot.lane.b32.xlu1 %v554_v25, %s2535_s18 }
 0x13b   : > { %v577_v14 = vsel %vm480_vm4, %v573_v28, %v575_v44  ;;  %v581_v30 = vmul.f32 %v573_v28, %v1999_v15  ;;  %v621_v15 = vrot.slane %v617_v40, 6  ;;  %v795_v29 = vrot.slane %v793_v51, 6 }
 0x13c   : > { %v1006_v59 = vpop.permute.xlu0 %1005  ;;  %v582_v32 = vmul.f32 %v577_v14, %v2012_v19 }
 0x13d   : > { %v2354_v39 = vpop.permute.xlu2 %1052  ;;  %v1009_v63 = vrot.slane %v1006_v59, 4  ;;  %797 = vst [vmem:[#allocation2 + $0x30] sm:$0xcc] %v795_v29 }
 0x13e   : > { %v584_v38 = vpack.c.bf16 %v582_v32, %v581_v30  ;;  %v1055_v9 = vrot.slane %v2354_v39, 4 }
 0x140   : > { %558 = vrot.lane.b32.xlu2 %v555_v24, %s2535_s18  ;;  %588 = vrot.lane.b32.xlu0 %v584_v38, %s2537_s17 }
 0x142   : > { %v1113_v16 = vpop.permute.xlu1 %1112  ;;  %590 = vrot.lane.b32.xlu1 %v585_v1, %s2537_s17 }
 0x143   : > { %v1115_v42 = vrot.slane %v1113_v16, 4 }
 0x144   : > { %v1039_v43 = vpop.permute.xlu0 %1038 }
 0x145   : > { %v1041_v21 = vrot.slane %v1039_v43, 4  ;;  %v1116_v44 = vsel %vm412_vm14, %v1114_v37, %v1115_v42  ;;  %v883_v50 = vpop.permute.xlu2 %882 }
 0x146   : > { %v1117_v45 = vsel %vm461_vm2, %v1111_v53, %v1116_v44  ;;  %v886_v53 = vrot.slane %v883_v50, 4 }
 0x147   : > { %v1042_v47 = vsel %vm412_vm14, %v1040_v33, %v1041_v21  ;;  %1119 = vst [vmem:[#allocation2 + $0x60] sm:$0x33] %v1117_v45 }
 0x148   : > { %v1043_v54 = vsel %vm514_vm6, %v1037_v18, %v1042_v47  ;;  %622 = vrot.lane.b32.xlu2 %v620_v49, %s2533_s13  ;;  %624 = vrot.lane.b32.xlu0 %v621_v15, %s2533_s13  ;;  %vm1307_vm6 = vcmask 1045504  }
 0x149   : > { %1045 = vst [vmem:[#allocation2 + $0x50] sm:$0xcc] %v1043_v54 }
 0x14a   : > { %v1171_v55 = vpop.permute.xlu1 %1170 }
 0x14b   : > { %v1174_v57 = vrot.slane %v1171_v55, 4 }
 0x14c   : > { %v1082_v36 = vpop.permute.xlu0 %1081 }
 0x14d   : > { %v1176_v58 = vsel %vm412_vm14, %v1174_v57, %v1175_v56  ;;  %v918_v48 = vpop.permute.xlu2 %917  ;;  %v1085_v30 = vrot.slane %v1082_v36, 4 }
 0x14e   : > { %v1177_v60 = vsel %vm394_vm1, %v1171_v55, %v1176_v58  ;;  %v1659_v7 = vld [vmem:[#allocation2 + $0x60] sm:$0xf]  ;;  %v1691_v13 = vld [vmem:[#allocation2 + $0x64] sm:$0xf]  ;;  %v920_v39 = vrot.slane %v918_v48, 4 }
 0x14f   : > { %1179 = vst [vmem:[#allocation2 + $0x68] sm:$0x33] %v1177_v60 }
 0x152   : > { %v1008_v61 = vpop.permute.xlu1 %1007 }
 0x153   : > { %v1010_v0 = vrot.slane %v1008_v61, 4 }
 0x154   : > { %v885_v2 = vpop.permute.xlu0 %884 }
 0x155   : > { %v887_v3 = vrot.slane %v885_v2, 4  ;;  %v1011_v6 = vsel %vm412_vm14, %v1009_v63, %v1010_v0  ;;  %v977_v25 = vpop.permute.xlu2 %976 }
 0x156   : > { %v1012_v5 = vsel %vm480_vm4, %v1006_v59, %v1011_v6  ;;  %v1692_v12 = vld [vmem:[#allocation2 + $0x64] sm:$0x30]  ;;  %v1661_v4 = vld [vmem:[#allocation2 + $0x68] sm:$0x30]  ;;  %vm529_vm4 = vcmask 523264   ;;  %v980_v31 = vrot.slane %v977_v25, 4 }
 0x157   : > { %v888_v11 = vsel %vm412_vm14, %v886_v53, %v887_v3  ;;  %1014 = vst [vmem:[#allocation2 + $0x50] sm:$0x33] %v1012_v5  ;;  %v1660_v10 = vor.u32 %v1692_v12, %v1659_v7  ;;  %v1664_v17 = vor.u32 %v1691_v13, %v1661_v4 }
 0x158   : > { %v890_v8 = vsel %vm706_vm12, %v883_v50, %v888_v11 }
 0x159   : > { %892 = vst [vmem:[#allocation2 + $0x40] sm:$0x33] %v890_v8  ;;  %v1309_v18 = vsel %vm1307_vm6, %v1660_v10, 0  ;;  %v1312_v20 = vsel %vm1307_vm6, %v1664_v17, 0 }
 0x15a   : > { %1315 = vmatpush.bf16.msra.mxu0 %v1309_v18  ;;  %1693 = vmatpush.bf16.msra.mxu2 %v1309_v18  ;;  %v1051_v22 = vpop.permute.xlu1 %1050 }
 0x15b   : > { %1334 = vmatpush.bf16.msra.mxu1 %v1312_v20  ;;  %1700 = vmatpush.bf16.msra.mxu3 %v1312_v20  ;;  %v1054_v62 = vrot.slane %v1051_v22, 4 }
 0x15c   : > { %v946_v23 = vpop.permute.xlu0 %945 }
 0x15d   : > { %v1056_v26 = vsel %vm412_vm14, %v1054_v62, %v1055_v9  ;;  %v785_v52 = vpop.permute.xlu2 %784  ;;  %v949_v47 = vrot.slane %v946_v23, 4 }
 0x15e   : > { %v1057_v28 = vsel %vm529_vm4, %v1051_v22, %v1056_v26  ;;  %v1651_v41 = vld [vmem:[#allocation2 + $0x50] sm:$0xf]  ;;  %v1689_v43 = vld [vmem:[#allocation2 + $0x54] sm:$0xf]  ;;  %v787_v61 = vrot.slane %v785_v52, 4  ;;  %v526_v26 = vrot.slane %v2133_v46, 4 }
 0x15f   : > { %1059 = vst [vmem:[#allocation2 + $0x58] sm:$0x33] %v1057_v28 }
 0x162   : > { %v1084_v14 = vpop.permute.xlu1 %1083 }
 0x163   : > { %v1086_v59 = vrot.slane %v1084_v14, 4 }
 0x164   : > { %v979_v27 = vpop.permute.xlu0 %978 }
 0x165   : > { %v981_v32 = vrot.slane %v979_v27, 4  ;;  %v1087_v34 = vsel %vm412_vm14, %v1085_v30, %v1086_v59  ;;  %v852_v44 = vpop.permute.xlu2 %851 }
 0x166   : > { %v1088_v35 = vsel %vm493_vm3, %v1082_v36, %v1087_v34  ;;  %v855_v50 = vrot.slane %v852_v44, 4 }
 0x167   : > { %v982_v19 = vsel %vm412_vm14, %v980_v31, %v981_v32  ;;  %1090 = vst [vmem:[#allocation2 + $0x58] sm:$0xcc] %v1088_v35 }
 0x168   : > { %v983_v24 = vsel %vm448_vm5, %v977_v25, %v982_v19 }
 0x169   : > { %985 = vst [vmem:[#allocation2 + $0x48] sm:$0xcc] %v983_v24 }
 0x16a   : > { %v916_v38 = vpop.permute.xlu1 %915 }
 0x16b   : > { %v919_v1 = vrot.slane %v916_v38, 4 }
 0x16c   : > { %v819_v40 = vpop.permute.xlu0 %818 }
 0x16d   : > { %v921_v16 = vsel %vm412_vm14, %v919_v1, %v920_v39  ;;  %v822_v4 = vrot.slane %v819_v40, 4 }
 0x16e   : > { %v923_v37 = vsel %vm673_vm11, %v916_v38, %v921_v16  ;;  %v1690_v42 = vld [vmem:[#allocation2 + $0x54] sm:$0xf0]  ;;  %v1653_v15 = vld [vmem:[#allocation2 + $0x58] sm:$0xf0] }
 0x16f   : > { %925 = vst [vmem:[#allocation2 + $0x40] sm:$0xcc] %v923_v37  ;;  %v1652_v33 = vor.u32 %v1690_v42, %v1651_v41  ;;  %v1656_v21 = vor.u32 %v1689_v43, %v1653_v15 }
 0x171   : > { %1316 = vmatpush.bf16.msra.mxu0 %v1652_v33  ;;  %1694 = vmatpush.bf16.msra.mxu2 %v1652_v33 }
 0x172   : > { %1335 = vmatpush.bf16.msra.mxu1 %v1656_v21  ;;  %1701 = vmatpush.bf16.msra.mxu3 %v1656_v21  ;;  %v948_v45 = vpop.permute.xlu1 %947 }
 0x173   : > { %v950_v49 = vrot.slane %v948_v45, 4  ;;  %v657_v12 = vpop.permute.xlu2 %656 }
 0x174   : > { %v854_v54 = vpop.permute.xlu0 %853 }
 0x175   : > { %v856_v55 = vrot.slane %v854_v54, 4  ;;  %v951_v56 = vsel %vm412_vm14, %v949_v47, %v950_v49 }
 0x176   : > { %v952_v57 = vsel %vm414_vm7, %v946_v23, %v951_v56  ;;  %v1643_v2 = vld [vmem:[#allocation2 + $0x40] sm:$0xf]  ;;  %v1687_v6 = vld [vmem:[#allocation2 + $0x44] sm:$0xf]  ;;  %v659_v23 = vrot.slane %v657_v12, 4 }
 0x177   : > { %v857_v36 = vsel %vm412_vm14, %v855_v50, %v856_v55  ;;  %954 = vst [vmem:[#allocation2 + $0x48] sm:$0x33] %v952_v57 }
 0x178   : > { %v859_v58 = vsel %vm737_vm15, %v852_v44, %v857_v36 }
 0x179   : > { %861 = vst [vmem:[#allocation2 + $0x38] sm:$0xcc] %v859_v58  ;;  %v1198_v58 = vld [vmem:[%s2491_s4] sm:$0xff] }
 0x17a   : > { %v783_v60 = vpop.permute.xlu1 %782 }
 0x17b   : > { %v786_v63 = vrot.slane %v783_v60, 4 }
 0x17c   : > { %v688_v48 = vpop.permute.xlu0 %687 }
 0x17d   : > { %v788_v0 = vsel %vm412_vm14, %v786_v63, %v787_v61  ;;  %v691_v39 = vrot.slane %v688_v48, 4  ;;  %v1859_v63 = vmov 0  }
 0x17e   : > { %v790_v53 = vsel %vm789_vm10, %v783_v60, %v788_v0  ;;  %v1688_v3 = vld [vmem:[#allocation2 + $0x44] sm:$0xf0]  ;;  %v1645_v7 = vld [vmem:[#allocation2 + $0x48] sm:$0xf0]  ;;  %1783 = vset.pattern.permute.xlu1 %v1859_v63  ;;  %1785 = vset.pattern.permute.xlu0 %v1859_v63 }
 0x17f   : > { %792 = vst [vmem:[#allocation2 + $0x30] sm:$0x33] %v790_v53  ;;  %v1644_v5 = vor.u32 %v1688_v3, %v1643_v2  ;;  %v1648_v11 = vor.u32 %v1687_v6, %v1645_v7  ;;  %v1200_v60 = vld [vmem:[%s2491_s4 + $0x10] sm:$0xff]  ;;  %1204 = vperm.xlu1 %1783, %v1198_v58   ;;  %1784 = vset.pattern.permute.xlu2 %v1859_v63 }
 0x180   : > { %1214 = vperm.xlu0 %1785, %v1200_v60  }
 0x181   : > { %1317 = vmatpush.bf16.msra.mxu0 %v1644_v5  ;;  %1695 = vmatpush.bf16.msra.mxu2 %v1644_v5  ;;  %v1201_v5 = vld [vmem:[%s2491_s4 + $0x18] sm:$0xff] }
 0x182   : > { %1336 = vmatpush.bf16.msra.mxu1 %v1648_v11  ;;  %1702 = vmatpush.bf16.msra.mxu3 %v1648_v11  ;;  %v821_v13 = vpop.permute.xlu1 %820 }
 0x183   : > { %v823_v8 = vrot.slane %v821_v13, 4 }
 0x184   : > { %v721_v10 = vpop.permute.xlu0 %720 }
 0x185   : > { %v824_v17 = vsel %vm412_vm14, %v822_v4, %v823_v8  ;;  %v723_v18 = vrot.slane %v721_v10, 4 }
 0x186   : > { %v826_v9 = vsel %vm770_vm13, %v819_v40, %v824_v17  ;;  %v1635_v14 = vld [vmem:[#allocation2 + $0x30] sm:$0xf]  ;;  %v1685_v31 = vld [vmem:[#allocation2 + $0x34] sm:$0xf] }
 0x187   : > { %828 = vst [vmem:[#allocation2 + $0x38] sm:$0x33] %v826_v9  ;;  %1219 = vperm.xlu1 %1783, %v1201_v5  }
 0x18a   : > { %v719_v20 = vpop.permute.xlu2 %718 }
 0x18b   : > { %v722_v22 = vrot.slane %v719_v20, 4 }
 0x18c   : > { %v655_v62 = vpop.permute.xlu1 %654  ;;  %v525_v51 = vpop.permute.xlu0 %524 }
 0x18d   : > { %v658_v25 = vrot.slane %v655_v62, 4  ;;  %v724_v28 = vsel %vm412_vm14, %v722_v22, %v723_v18  ;;  %v527_v29 = vrot.slane %v525_v51, 4  ;;  %v1680_v51 = vld [vmem:[#allocation2 + $0x4] sm:$0xf0] }
 0x18e   : > { %v726_v30 = vsel %vm725_vm8, %v719_v20, %v724_v28  ;;  %v1686_v27 = vld [vmem:[#allocation2 + $0x34] sm:$0xf0]  ;;  %v1637_v32 = vld [vmem:[#allocation2 + $0x38] sm:$0xf0] }
 0x18f   : > { %v660_v59 = vsel %vm412_vm14, %v658_v25, %v659_v23  ;;  %728 = vst [vmem:[#allocation2 + $0x28] sm:$0x33] %v726_v30  ;;  %v528_v34 = vsel %vm412_vm14, %v526_v26, %v527_v29  ;;  %v1636_v19 = vor.u32 %v1686_v27, %v1635_v14  ;;  %v1640_v52 = vor.u32 %v1685_v31, %v1637_v32  ;;  %v1679_v23 = vld [vmem:[#allocation2 + $0x4] sm:$0xf]  ;;  %v1613_v26 = vld [vmem:[#allocation2 + $0x8] sm:$0xf0] }
 0x190   : > { %v662_v35 = vsel %vm394_vm1, %v655_v62, %v660_v59  ;;  %v530_v24 = vsel %vm529_vm4, %v2133_v46, %v528_v34  ;;  %vm2550_vm1 = vcmask 56320   ;;  %v1611_v62 = vld [vmem:[#allocation2] sm:$0xf]  ;;  %v1616_v28 = vor.u32 %v1679_v23, %v1613_v26  ;;  %v1677_v29 = vld [vmem:[%s2490_s3] sm:$0xff] }
 0x191   : > { %664 = vst [vmem:[#allocation2 + $0x20] sm:$0x33] %v662_v35  ;;  %1318 = vmatpush.bf16.msra.mxu0 %v1636_v19  ;;  %1696 = vmatpush.bf16.msra.mxu2 %v1636_v19  ;;  %v1612_v25 = vor.u32 %v1680_v51, %v1611_v62  ;;  %v1678_v14 = vld [vmem:[%s2490_s3 + $0x8] sm:$0xff]  ;;  %v1360_v30 = vld [vmem:[%s1993_s29] sm:$0xff]  ;;  %s1708_s29 = smul.u32 (%p1941_p5), 20, %s1828_s24 }
 0x192   : > { %532 = vst [vmem:[#allocation2 + $0x10] sm:$0x33] %v530_v24  ;;  %1337 = vmatpush.bf16.msra.mxu1 %v1640_v52  ;;  %1703 = vmatpush.bf16.msra.mxu3 %v1640_v52  ;;  %v754_v41 = vpop.permute.xlu2 %753 }
 0x193   : > { %v756_v42 = vrot.slane %v754_v41, 4  ;;  %1362 = vst [vmem:[#allocation1] ss:$2 sm:$0xff] %v1360_v30  ;;  %s1421_s20 = sadd.s32 (%p1941_p5), %s1708_s29, %s1969_s9 }
 0x194   : > { %v690_v38 = vpop.permute.xlu1 %689  ;;  %s1670_s11 = sshll.u32 (%p1941_p5), %s1421_s20, 3 }
 0x195   : > { %v692_v1 = vrot.slane %v690_v38, 4  ;;  %s1423_s8 = scalar_lea.vmem (%p1941_p5), %s2493_s6, %s1670_s11 }
 0x197   : > { %v693_v40 = vsel %vm412_vm14, %v691_v39, %v692_v1 }
 0x198   : > { %v695_v16 = vsel %vm694_vm9, %v688_v48, %v693_v40  ;;  %v1199_v48 = vld [vmem:[%s2491_s4 + $0x8] sm:$0xff] }
 0x199   : > { %697 = vst [vmem:[#allocation2 + $0x20] sm:$0xcc] %v695_v16  ;;  %1209 = vperm.xlu2 %1784, %v1199_v48  }
 0x19a   : > { %v559_v54 = vpop.permute.xlu2 %558  ;;  %v1363_v19 = vld.sshfl [vmem:[#allocation1] sm:$0xff pattern:$0x75316420]  ;;  %v1364_v39 = vld.sshfl [vmem:[#allocation1 + $0x8] sm:$0xff pattern:$0x75316420] }
 0x19b   : > { %v561_v55 = vrot.slane %v559_v54, 4 }
 0x19c   : > { %v752_v37 = vpop.permute.xlu1 %751 }
 0x19d   : > { %v755_v43 = vrot.slane %v752_v37, 4 }
 0x19f   : > { %v757_v46 = vsel %vm412_vm14, %v755_v43, %v756_v42 }
 0x1a0   : > { %v759_v15 = vsel %vm2550_vm1, %v752_v37, %v757_v46  ;;  %v1627_v33 = vld [vmem:[#allocation2 + $0x20] sm:$0xf]  ;;  %v1683_v44 = vld [vmem:[#allocation2 + $0x24] sm:$0xf] }
 0x1a1   : > { %761 = vst [vmem:[#allocation2 + $0x28] sm:$0xcc] %v759_v15 }
 0x1a2   : > { %v623_v6 = vpop.permute.xlu2 %622 }
 0x1a3   : > { %v626_v12 = vrot.slane %v623_v6, 4 }
 0x1a8   : > { %v1684_v21 = vld [vmem:[#allocation2 + $0x24] sm:$0xf0]  ;;  %v1629_v45 = vld [vmem:[#allocation2 + $0x28] sm:$0xf0] }
 0x1a9   : > { %v1628_v47 = vor.u32 %v1684_v21, %v1627_v33  ;;  %v1632_v49 = vor.u32 %v1683_v44, %v1629_v45 }
 0x1ab   : > { %1319 = vmatpush.bf16.msra.mxu0 %v1628_v47  ;;  %1697 = vmatpush.bf16.msra.mxu2 %v1628_v47 }
 0x1ac   : > { %1338 = vmatpush.bf16.msra.mxu1 %v1632_v49  ;;  %1704 = vmatpush.bf16.msra.mxu3 %v1632_v49  ;;  %v557_v50 = vpop.permute.xlu1 %556 }
 0x1ad   : > { %v560_v56 = vrot.slane %v557_v50, 4 }
 0x1af   : > { %v562_v57 = vsel %vm412_vm14, %v560_v56, %v561_v55 }
 0x1b0   : > { %v564_v36 = vsel %vm493_vm3, %v557_v50, %v562_v57 }
 0x1b1   : > { %566 = vst [vmem:[#allocation2 + $0x10] sm:$0xcc] %v564_v36 }
 0x1b2   : > { %v589_v61 = vpop.permute.xlu0 %588 }
 0x1b3   : > { %v592_v2 = vrot.slane %v589_v61, 4 }
 0x1b4   : > { %v591_v0 = vpop.permute.xlu1 %590 }
 0x1b5   : > { %v593_v53 = vrot.slane %v591_v0, 4 }
 0x1b7   : > { %v594_v3 = vsel %vm412_vm14, %v592_v2, %v593_v53 }
 0x1b8   : > { %v596_v7 = vsel %vm461_vm2, %v589_v61, %v594_v3  ;;  %v1619_v10 = vld [vmem:[#allocation2 + $0x10] sm:$0xf]  ;;  %v1681_v9 = vld [vmem:[#allocation2 + $0x14] sm:$0xf] }
 0x1b9   : > { %598 = vst [vmem:[#allocation2 + $0x18] sm:$0x33] %v596_v7 }
 0x1ba   : > { %v625_v11 = vpop.permute.xlu0 %624 }
 0x1bb   : > { %v627_v13 = vrot.slane %v625_v11, 4 }
 0x1bd   : > { %v628_v4 = vsel %vm412_vm14, %v626_v12, %v627_v13 }
 0x1be   : > { %v630_v8 = vsel %vm427_vm0, %v623_v6, %v628_v4  ;;  %vm1300_vm0 = vcmask 883712  }
 0x1bf   : > { %632 = vst [vmem:[#allocation2 + $0x18] sm:$0xcc] %v630_v8 }
 0x1c6   : > { %v1682_v17 = vld [vmem:[#allocation2 + $0x14] sm:$0xf0]  ;;  %v1621_v18 = vld [vmem:[#allocation2 + $0x18] sm:$0xf0] }
 0x1c7   : > { %v1620_v20 = vor.u32 %v1682_v17, %v1619_v10  ;;  %v1624_v22 = vor.u32 %v1681_v9, %v1621_v18 }
 0x1c9   : > { %1320 = vmatpush.bf16.msra.mxu0 %v1620_v20  ;;  %1698 = vmatpush.bf16.msra.mxu2 %v1620_v20 }
 0x1ca   : > { %1339 = vmatpush.bf16.msra.mxu1 %v1624_v22  ;;  %1705 = vmatpush.bf16.msra.mxu3 %v1624_v22 }
 0x1cd   : > { %1321 = vmatpush.bf16.msra.mxu0 %v1612_v25  ;;  %1699 = vmatpush.bf16.msra.mxu2 %v1612_v25 }
 0x1ce   : > { %1340 = vmatpush.bf16.msra.mxu1 %v1616_v28  ;;  %1706 = vmatpush.bf16.msra.mxu3 %v1616_v28 }
 0x1d0   : > { %1665 = vmatmul.msk.bf16.vlgmr.msra.gmra.mxu0 %vm1300_vm0, %v1677_v29  ;;  %1666 = vmatmul.msk.bf16.vlgmr.msra.gmra.mxu2 %vm1300_vm0, %v1678_v14 }
 0x1d1   : > { %1667 = vmatmul.msk.bf16.vlgmr.msra.gmra.mxu1 %vm1300_vm0, %v1677_v29  ;;  %1668 = vmatmul.msk.bf16.vlgmr.msra.gmra.mxu3 %vm1300_vm0, %v1678_v14 }
 0x1f1   : > { %v1205_v59 = vpop.permute.xlu1 %1204 }
 0x1f2   : > { %v1215_v24 = vpop.permute.xlu0 %1214 }
 0x1f3   : > { %v1210_v16 = vpop.permute.xlu2 %1209 }
 0x1f9   : > { %v1220_v57 = vpop.permute.xlu1 %1219 }
 0x24d   : > { %v1323_v27 = vpop.f32.mrf.mxu0 }
 0x24e   : > { %v1324_v31 = vadd.f32 %v1323_v27, %v1205_v59  ;;  %v1342_v32 = vpop.f32.mrf.mxu1 }
 0x24f   : > { %v1343_v34 = vadd.f32 %v1342_v32, %v1205_v59 }
 0x250   : > { %v1352_v35 = vmax.f32 %v1324_v31, 0.0 }
 0x251   : > { %v1353_v52 = vmax.f32 %v1343_v34, 0.0 }
 0x252   : > { %v1376_v38 = vrot.slane %v1352_v35, 4 }
 0x253   : > { %v1377_v1 = vrot.slane %v1353_v52, 4  ;;  %v1328_v40 = vpop.f32.mrf.mxu2 }
 0x254   : > { %v1400_v41 = vsel %vm412_vm14, %v1363_v19, %v1376_v38  ;;  %v1329_v37 = vadd.f32 %v1328_v40, %v1215_v24  ;;  %v1347_v42 = vpop.f32.mrf.mxu3 }
 0x255   : > { %1402 = vst [vmem:[%s2430_s21] sm:$0xff] %v1400_v41  ;;  %v1401_v43 = vsel %vm412_vm14, %v1364_v39, %v1377_v1  ;;  %v1348_v46 = vadd.f32 %v1347_v42, %v1215_v24  ;;  %v1325_v15 = vpop.f32.mrf.mxu0 }
 0x256   : > { %1403 = vst [vmem:[%s2430_s21 + $0x8] sm:$0xff] %v1401_v43  ;;  %v1356_v33 = vmax.f32 %v1329_v37, 0.0  ;;  %v1326_v21 = vadd.f32 %v1325_v15, %v1210_v16  ;;  %v1344_v44 = vpop.f32.mrf.mxu1 }
 0x257   : > { %v1357_v45 = vmax.f32 %v1348_v46, 0.0  ;;  %v1345_v47 = vadd.f32 %v1344_v44, %v1210_v16 }
 0x258   : > { %v1354_v49 = vmax.f32 %v1326_v21, 0.0  ;;  %v1382_v50 = vrot.slane %v1356_v33, 4 }
 0x259   : > { %v1355_v54 = vmax.f32 %v1345_v47, 0.0  ;;  %v1384_v56 = vrot.slane %v1357_v45, 4 }
 0x25a   : > { %v1378_v55 = vrot.slane %v1354_v49, 4 }
 0x25b   : > { %v1380_v36 = vrot.slane %v1355_v54, 4  ;;  %v1330_v58 = vpop.f32.mrf.mxu2 }
 0x25c   : > { %v1379_v60 = vsel %vm412_vm14, %v1376_v38, %v1378_v55  ;;  %v1383_v61 = vsel %vm412_vm14, %v1378_v55, %v1382_v50  ;;  %v1331_v63 = vadd.f32 %v1330_v58, %v1220_v57  ;;  %v1349_v48 = vpop.f32.mrf.mxu3  ;;  %v1436_v13 = vld [vmem:[%s2430_s21] sm:$0xff] (%p1941_p5) }
 0x25d   : > { %1404 = vst [vmem:[%s2430_s21 + $0x10] sm:$0xff] %v1379_v60  ;;  %v1381_v0 = vsel %vm412_vm14, %v1377_v1, %v1380_v36  ;;  %v1385_v2 = vsel %vm412_vm14, %v1380_v36, %v1384_v56  ;;  %v1350_v53 = vadd.f32 %v1349_v48, %v1220_v57  ;;  %v1438_v4 = vld [vmem:[%s2430_s21 + $0x8] sm:$0xff] (%p1941_p5) }
 0x25e   : > { %1406 = vst [vmem:[%s2430_s21 + $0x20] sm:$0xff] %v1383_v61  ;;  %v1358_v3 = vmax.f32 %v1331_v63, 0.0 }
 0x25f   : > { %1405 = vst [vmem:[%s2430_s21 + $0x18] sm:$0xff] %v1381_v0  ;;  %v1359_v6 = vmax.f32 %v1350_v53, 0.0 }
 0x260   : > { %1407 = vst [vmem:[%s2430_s21 + $0x28] sm:$0xff] %v1385_v2  ;;  %v1386_v7 = vrot.slane %v1358_v3, 4 }
 0x261   : > { %v1388_v5 = vrot.slane %v1359_v6, 4  ;;  %1418 = sbr.rel (!%p1941_p5) target bundleno = 623 (0x26f), region = 48  ;;  %1437 = vst [vmem:[%s1423_s8] sm:$0xff] (%p1941_p5), %v1436_v13 }
 0x262   : > { %v1387_v11 = vsel %vm412_vm14, %v1382_v50, %v1386_v7  ;;  %1410 = vst [vmem:[%s2430_s21 + $0x40] sm:$0xf] %v1386_v7 }
 0x263   : > { %1408 = vst [vmem:[%s2430_s21 + $0x30] sm:$0xff] %v1387_v11  ;;  %v1389_v12 = vsel %vm412_vm14, %v1384_v56, %v1388_v5 }
 0x264   : > { %1409 = vst [vmem:[%s2430_s21 + $0x38] sm:$0xff] %v1389_v12  ;;  %v1440_v8 = vld [vmem:[%s2430_s21 + $0x10] sm:$0xff] (%p1941_p5) }
 0x265   : > { %1411 = vst [vmem:[%s2430_s21 + $0x48] sm:$0xf] %v1388_v5  ;;  %v1444_v17 = vld [vmem:[%s2430_s21 + $0x20] sm:$0xff] (%p1941_p5) }
 0x266   : > { %v1442_v10 = vld [vmem:[%s2430_s21 + $0x18] sm:$0xff]  ;;  %1439 = vst [vmem:[%s1423_s8 + $0x8] sm:$0xff] %v1438_v4 }
 0x267   : > { %1441 = vst [vmem:[%s1423_s8 + $0x20] sm:$0xff] %v1440_v8  ;;  %v1446_v9 = vld [vmem:[%s2430_s21 + $0x28] sm:$0xff] }
 0x268   : > { %1443 = vst [vmem:[%s1423_s8 + $0x28] sm:$0xff] %v1442_v10 }
 0x269   : > { %1445 = vst [vmem:[%s1423_s8 + $0x40] sm:$0xff] %v1444_v17  ;;  %v1452_v22 = vld [vmem:[%s2430_s21 + $0x40] sm:$0xff] }
 0x26a   : > { %v1448_v18 = vld [vmem:[%s2430_s21 + $0x30] sm:$0xff]  ;;  %1447 = vst [vmem:[%s1423_s8 + $0x48] sm:$0xff] %v1446_v9 }
 0x26b   : > { %v1450_v20 = vld [vmem:[%s2430_s21 + $0x38] sm:$0xff]  ;;  %1449 = vst [vmem:[%s1423_s8 + $0x60] sm:$0xff] %v1448_v18 }
 0x26c   : > { %v1454_v62 = vld [vmem:[%s2430_s21 + $0x48] sm:$0xff]  ;;  %1451 = vst [vmem:[%s1423_s8 + $0x68] sm:$0xff] %v1450_v20 }
 0x26d   : > { %1453 = vst [vmem:[%s1423_s8 + $0x80] sm:$0xff] %v1452_v22 }
 0x26e   : > { %1455 = vst [vmem:[%s1423_s8 + $0x88] sm:$0xff] %v1454_v62 }
 0x26f PF: > { %s16_s27 = sadd.s32 1, %s1840_s27   ;;  %s2551_s9 = sld [smem:[#allocation4_spill]] }
 0x270   : > { %p13_p13 = scmp.ge.s32.totalorder %s16_s27, 6   ;;  %s2552_s17 = sld [smem:[#allocation5_spill]] }
 0x271   : > { %s2553_s21 = smov %s1820_s22  ;;  %s2554_s22 = smov %s1952_s12 }
 0x272   : > { %s2555_s23 = smov %s1832_s25  ;;  %s2556_s24 = smov %s1836_s26 }
 0x273   :  { %15 = sbr.rel (!%p13_p13) target bundleno = 7 (0x7), region = 110 }
 0x275   : > { %s2557_s25 = smov %s2551_s9 }
 0x276   : > { %s2558_s26 = smov %s2552_s17 }

</bundles_post_ra>
